<compile_context>
chip_gen: v7x
topology: tpu7x:2x2x1
jax: 0.10.0
libtpu: 0.0.40
codegen_flags: <defaults>
</compile_context>

<pallas_src>
import functools

import jax
import jax.numpy as jnp
from jax import lax
from jax.experimental import pallas as pl
from jax.experimental.pallas import tpu as pltpu


# ------------------------------- kernels ---------------------------------

def _gating_kernel(x_ref, w1_ref, b1_ref, w2_ref, b2_ref, w3_ref, b3_ref, g_ref):
    """conv_du branch.  Spatial length is 1, so each conv == matmul with its
    centre tap; the TB batch rows are the MXU M dimension."""
    cd = w1_ref.dtype
    x = x_ref[...]                                                    # (TB, T) f32
    h = jnp.dot(x.astype(cd), w1_ref[...],
                preferred_element_type=jnp.float32) + b1_ref[...]
    h = jnp.maximum(h, 0.0)                                           # (TB, 2T)
    h = jnp.dot(h.astype(cd), w2_ref[...],
                preferred_element_type=jnp.float32) + b2_ref[...]
    h = jnp.maximum(h, 0.0)                                           # (TB, 2T)
    z = jnp.dot(h.astype(cd), w3_ref[...],
                preferred_element_type=jnp.float32) + b3_ref[...]     # (TB, T)
    g_ref[...] = x * jax.nn.sigmoid(z)                                # gated signal


def _expansion_kernel(T, g_ref, tmod_ref, e1_ref, be1_ref, w2_ref, be2_ref,
                      w3_ref, be3_ref, o_ref):
    """expansion branch on a lane-dense (channels, TB*T) layout.

    Every conv is a single MXU matmul against pre-stacked (C, K*Cin) weights;
    the (K*Cin, TB*T) im2col is built in registers from tap-shifted slices,
    with iota masks keeping each batch's taps inside its own T-long segment."""
    cd = e1_ref.dtype
    tmod = tmod_ref[...]                                              # (1, N) int32: t index of column
    g = g_ref[...]                                                    # (1, N) f32
    n = g.shape[-1]

    def conv_cols(y, pad):
        rows = y.shape[0]
        zpad = jnp.zeros((rows, pad), jnp.float32)
        ypad = jnp.concatenate([zpad, y, zpad], axis=1)               # (rows, N + 2*pad)
        pieces = []
        for k in range(2 * pad + 1):
            s = k - pad                                               # time shift of this tap
            shifted = ypad[:, k:k + n]                                # == y[:, j + s]
            ok = (tmod >= -s) & (tmod < T - s)                        # stay inside own batch segment
            pieces.append(jnp.where(ok, shifted, 0.0))
        return jnp.concatenate(pieces, axis=0).astype(cd)             # (K*rows, N)

    y = jnp.dot(e1_ref[...], conv_cols(g, 3),
                preferred_element_type=jnp.float32) + be1_ref[...]    # 1 -> C, k=7
    y = jnp.dot(w2_ref[...], conv_cols(y, 2),
                preferred_element_type=jnp.float32) + be2_ref[...]    # C -> C, k=5
    y = jnp.dot(w3_ref[...], conv_cols(y, 1),
                preferred_element_type=jnp.float32) + be3_ref[...]    # C -> C, k=3
    o_ref[...] = jnp.maximum(y, 0.0)                                  # final ReLU


# ------------------------------- wrapper ----------------------------------

def _weight_norm(v, g):
    # torch.nn.utils.weight_norm, default dim=0: w = g * v / ||v||,
    # one scale per output channel, norm over all remaining dims.
    norm = jnp.sqrt(jnp.sum(v * v, axis=(1, 2), keepdims=True))
    return v * (g.reshape(-1, 1, 1) / norm)


def _const_spec(arr):
    nd = arr.ndim
    return pl.BlockSpec(arr.shape, lambda i, _nd=nd: (0,) * _nd)


def _pick_batch_tile(B, T, target_lanes=2048):
    cands = [tb for tb in range(8, B + 1, 8)
             if B % tb == 0 and (tb * T) % 128 == 0]
    if not cands:
        return B
    small = [tb for tb in cands if tb * T <= target_lanes]
    return max(small) if small else min(cands)


def attention_pallas(x, p, *, batch_tile=None, compute_dtype=jnp.float32):
    """Forward pass of Attention: x (B, 1, time) -> (B, out_channel, time)."""
    B, one, T = x.shape
    assert one == 1, "expansion branch requires in_channels == 1"
    C = p["E1"].shape[0]
    T2 = 2 * T
    TB = batch_tile if batch_tile is not None else _pick_batch_tile(B, T)
    assert B % TB == 0
    assert TB == B or (TB % 8 == 0 and (TB * T) % 128 == 0), (TB, T)
    grid = (B // TB,)
    N = TB * T
    cd = compute_dtype

    # fold weight_norm and take the centre taps for the conv_du matmuls
    W1 = _weight_norm(p["W1"], p["g1"])
    W2 = _weight_norm(p["W2"], p["g2"])
    W3 = _weight_norm(p["W3"], p["g3"])
    w1t = jnp.transpose(W1[:, :, 3]).astype(cd)                       # (T,  2T)
    w2t = jnp.transpose(W2[:, :, 2]).astype(cd)                       # (2T, 2T)
    w3t = jnp.transpose(W3[:, :, 1]).astype(cd)                       # (2T, T)
    b1 = p["b1"].reshape(1, T2).astype(jnp.float32)
    b2 = p["b2"].reshape(1, T2).astype(jnp.float32)
    b3 = p["b3"].reshape(1, T).astype(jnp.float32)

    x2d = x.reshape(B, T).astype(jnp.float32)
    parallel = pltpu.CompilerParams(dimension_semantics=("parallel",))

    # ---- kernel 1: gating branch, TB batch rows per grid step -------------
    gate = pl.pallas_call(
        _gating_kernel,
        out_shape=jax.ShapeDtypeStruct((B, T), jnp.float32),
        grid_spec=pltpu.PrefetchScalarGridSpec(
            num_scalar_prefetch=0,
            grid=grid,
            in_specs=[
                pl.BlockSpec((TB, T), lambda i: (i, 0)),
                _const_spec(w1t), _const_spec(b1),
                _const_spec(w2t), _const_spec(b2),
                _const_spec(w3t), _const_spec(b3),
            ],
            out_specs=pl.BlockSpec((TB, T), lambda i: (i, 0)),
        ),
        compiler_params=parallel,
    )(x2d, w1t, b1, w2t, b2, w3t, b3)

    # free row-major reshape: column j = b*T + t (batch folded onto lanes)
    gflat = gate.reshape(1, B * T)

    # expansion weights pre-stacked for one-matmul-per-conv im2col
    e1m = p["E1"][:, 0, :].astype(cd)                                        # (C, 7)
    w2s = jnp.transpose(p["E2"], (0, 2, 1)).reshape(C, 5 * C).astype(cd)     # (C, 5C)
    w3s = jnp.transpose(p["E3"], (0, 2, 1)).reshape(C, 3 * C).astype(cd)     # (C, 3C)
    be1 = p["bE1"].reshape(C, 1).astype(jnp.float32)
    be2 = p["bE2"].reshape(C, 1).astype(jnp.float32)
    be3 = p["bE3"].reshape(C, 1).astype(jnp.float32)
    tmod = jnp.tile(jnp.arange(T, dtype=jnp.int32)[None, :], (1, TB))        # (1, N)

    # ---- kernel 2: expansion branch, lane-dense (C, TB*T) blocks ----------
    out_flat = pl.pallas_call(
        functools.partial(_expansion_kernel, T),
        out_shape=jax.ShapeDtypeStruct((C, B * T), jnp.float32),
        grid_spec=pltpu.PrefetchScalarGridSpec(
            num_scalar_prefetch=0,
            grid=grid,
            in_specs=[
                pl.BlockSpec((1, N), lambda i: (0, i)),
                _const_spec(tmod),
                _const_spec(e1m), _const_spec(be1),
                _const_spec(w2s), _const_spec(be2),
                _const_spec(w3s), _const_spec(be3),
            ],
            out_specs=pl.BlockSpec((C, N), lambda i: (0, i)),
        ),
        compiler_params=parallel,
    )(gflat, tmod, e1m, be1, w2s, be2, w3s, be3)

    # (C, B*T) -> (B, C, T): wrapper-side layout plumbing only
    return jnp.transpose(out_flat.reshape(C, B, T), (1, 0, 2))


# ---------------- pure-JAX reference (real convolutions) ----------------

def _conv1d(x, w, b, pad):
    y = lax.conv_general_dilated(
        x, w, window_strides=(1,), padding=[(pad, pad)],
        dimension_numbers=("NCH", "OIH", "NCH"),
        precision=lax.Precision.HIGHEST)
    return y + b[None, :, None]


def attention_reference(x, p):
    W1 = _weight_norm(p["W1"], p["g1"])
    W2 = _weight_norm(p["W2"], p["g2"])
    W3 = _weight_norm(p["W3"], p["g3"])
    xt = jnp.transpose(x, (0, 2, 1))                 # (B, time, 1)
    z = jax.nn.relu(_conv1d(xt, W1, p["b1"], 3))
    z = jax.nn.relu(_conv1d(z, W2, p["b2"], 2))
    z = jax.nn.sigmoid(_conv1d(z, W3, p["b3"], 1))
    xt = xt * z
    xt = jnp.transpose(xt, (0, 2, 1))                # (B, 1, time)
    y = _conv1d(xt, p["E1"], p["bE1"], 3)
    y = _conv1d(y, p["E2"], p["bE2"], 2)
    y = _conv1d(y, p["E3"], p["bE3"], 1)
    return jax.nn.relu(y)


def init_params(key, T, C):
    ks = jax.random.split(key, 15)
    w = lambda k, s, sc: sc * jax.random.normal(k, s, jnp.float32)
    u = lambda k, s: jax.random.uniform(k, s, jnp.float32, 0.5, 1.5)
    return {
        # conv_du: v, g (weight_norm) and bias
        "W1": w(ks[0], (2 * T, T, 7), 0.05), "g1": u(ks[12], (2 * T,)), "b1": w(ks[1], (2 * T,), 0.05),
        "W2": w(ks[2], (2 * T, 2 * T, 5), 0.05), "g2": u(ks[13], (2 * T,)), "b2": w(ks[3], (2 * T,), 0.05),
        "W3": w(ks[4], (T, 2 * T, 3), 0.05), "g3": u(ks[14], (T,)), "b3": w(ks[5], (T,), 0.05),
        # expansion (plain convs, no weight_norm)
        "E1": w(ks[6], (C, 1, 7), 0.1), "bE1": w(ks[7], (C,), 0.1),
        "E2": w(ks[8], (C, C, 5), 0.1), "bE2": w(ks[9], (C,), 0.1),
        "E3": w(ks[10], (C, C, 3), 0.1), "bE3": w(ks[11], (C,), 0.1),
    }


if __name__ == "__main__":
    T, C, B = 32, 16, 16            # small test shapes: time=32, out_channel=16, batch=16
    key = jax.random.PRNGKey(0)
    kx, kp = jax.random.split(key)
    x = jax.random.normal(kx, (B, 1, T), jnp.float32)
    params = init_params(kp, T, C)

    fwd = jax.jit(functools.partial(attention_pallas, batch_tile=8))  # grid = (2,)
    out = jax.block_until_ready(fwd(x, params))

    ref = attention_reference(x, params)
    assert out.shape == (B, C, T)
    err = float(jnp.max(jnp.abs(out - ref)))
    assert jnp.allclose(out, ref, atol=2e-4, rtol=2e-3), err
    print("KERNEL_OK")
</pallas_src>

<mosaic_0001>
module attributes {stable_mosaic.version = 11 : i64} {
  func.func @_expansion_kernel(%arg0: i32, %arg1: memref<1x256xf32, #tpu.memory_space<vmem>>, %arg2: memref<1x256xi32, #tpu.memory_space<vmem>>, %arg3: memref<16x7xf32, #tpu.memory_space<vmem>>, %arg4: memref<16x1xf32, #tpu.memory_space<vmem>>, %arg5: memref<16x80xf32, #tpu.memory_space<vmem>>, %arg6: memref<16x1xf32, #tpu.memory_space<vmem>>, %arg7: memref<16x48xf32, #tpu.memory_space<vmem>>, %arg8: memref<16x1xf32, #tpu.memory_space<vmem>>, %arg9: memref<16x256xf32, #tpu.memory_space<vmem>>) attributes {dimension_semantics = [#tpu.dimension_semantics<parallel>], iteration_bounds = array<i64: 2>, scalar_prefetch = 0 : i64, scratch_operands = 0 : i64, tpu.core_type = #tpu.core_type<tc>, window_params = [{transform_indices = @transform_0, window_bounds = array<i64: 1, 256>}, {pipeline_mode = #tpu.pipeline_mode<synchronous>, transform_indices = @transform_1, window_bounds = array<i64: 1, 256>}, {pipeline_mode = #tpu.pipeline_mode<synchronous>, transform_indices = @transform_2, window_bounds = array<i64: 16, 7>}, {pipeline_mode = #tpu.pipeline_mode<synchronous>, transform_indices = @transform_3, window_bounds = array<i64: 16, 1>}, {pipeline_mode = #tpu.pipeline_mode<synchronous>, transform_indices = @transform_4, window_bounds = array<i64: 16, 80>}, {pipeline_mode = #tpu.pipeline_mode<synchronous>, transform_indices = @transform_5, window_bounds = array<i64: 16, 1>}, {pipeline_mode = #tpu.pipeline_mode<synchronous>, transform_indices = @transform_6, window_bounds = array<i64: 16, 48>}, {pipeline_mode = #tpu.pipeline_mode<synchronous>, transform_indices = @transform_7, window_bounds = array<i64: 16, 1>}, {transform_indices = @transform_8, window_bounds = array<i64: 16, 256>}]} {
    %c0 = arith.constant 0 : index
    %c0_0 = arith.constant 0 : index
    %0 = vector.load %arg2[%c0, %c0_0] : memref<1x256xi32, #tpu.memory_space<vmem>>, vector<1x256xi32>
    %c0_1 = arith.constant 0 : index
    %c0_2 = arith.constant 0 : index
    %1 = vector.load %arg1[%c0_1, %c0_2] : memref<1x256xf32, #tpu.memory_space<vmem>>, vector<1x256xf32>
    %c0_3 = arith.constant 0 : index
    %c0_4 = arith.constant 0 : index
    %2 = vector.load %arg3[%c0_3, %c0_4] : memref<16x7xf32, #tpu.memory_space<vmem>>, vector<16x7xf32>
    %cst = arith.constant 0.000000e+00 : f32
    %3 = vector.broadcast %cst : f32 to vector<1x3xf32>
    %4 = tpu.concatenate %3, %1, %3 in 1 : vector<1x3xf32>, vector<1x256xf32>, vector<1x3xf32> -> vector<1x262xf32>
    %5 = vector.extract_strided_slice %4 {offsets = [0, 0], sizes = [1, 256], strides = [1, 1]} : vector<1x262xf32> to vector<1x256xf32>
    %c3_i32 = arith.constant 3 : i32
    %6 = vector.broadcast %c3_i32 : i32 to vector<1x256xi32>
    %7 = arith.cmpi sge, %0, %6 : vector<1x256xi32>
    %c35_i32 = arith.constant 35 : i32
    %8 = vector.broadcast %c35_i32 : i32 to vector<1x256xi32>
    %9 = arith.cmpi slt, %0, %8 : vector<1x256xi32>
    %10 = arith.andi %7, %9 : vector<1x256xi1>
    %cst_5 = arith.constant 0.000000e+00 : f32
    %11 = vector.broadcast %cst_5 : f32 to vector<1x256xf32>
    %12 = arith.select %10, %5, %11 : vector<1x256xi1>, vector<1x256xf32>
    %13 = vector.extract_strided_slice %4 {offsets = [0, 1], sizes = [1, 256], strides = [1, 1]} : vector<1x262xf32> to vector<1x256xf32>
    %c2_i32 = arith.constant 2 : i32
    %14 = vector.broadcast %c2_i32 : i32 to vector<1x256xi32>
    %15 = arith.cmpi sge, %0, %14 : vector<1x256xi32>
    %c34_i32 = arith.constant 34 : i32
    %16 = vector.broadcast %c34_i32 : i32 to vector<1x256xi32>
    %17 = arith.cmpi slt, %0, %16 : vector<1x256xi32>
    %18 = arith.andi %15, %17 : vector<1x256xi1>
    %cst_6 = arith.constant 0.000000e+00 : f32
    %19 = vector.broadcast %cst_6 : f32 to vector<1x256xf32>
    %20 = arith.select %18, %13, %19 : vector<1x256xi1>, vector<1x256xf32>
    %21 = vector.extract_strided_slice %4 {offsets = [0, 2], sizes = [1, 256], strides = [1, 1]} : vector<1x262xf32> to vector<1x256xf32>
    %c1_i32 = arith.constant 1 : i32
    %22 = vector.broadcast %c1_i32 : i32 to vector<1x256xi32>
    %23 = arith.cmpi sge, %0, %22 : vector<1x256xi32>
    %c33_i32 = arith.constant 33 : i32
    %24 = vector.broadcast %c33_i32 : i32 to vector<1x256xi32>
    %25 = arith.cmpi slt, %0, %24 : vector<1x256xi32>
    %26 = arith.andi %23, %25 : vector<1x256xi1>
    %cst_7 = arith.constant 0.000000e+00 : f32
    %27 = vector.broadcast %cst_7 : f32 to vector<1x256xf32>
    %28 = arith.select %26, %21, %27 : vector<1x256xi1>, vector<1x256xf32>
    %29 = vector.extract_strided_slice %4 {offsets = [0, 3], sizes = [1, 256], strides = [1, 1]} : vector<1x262xf32> to vector<1x256xf32>
    %c0_i32 = arith.constant 0 : i32
    %30 = vector.broadcast %c0_i32 : i32 to vector<1x256xi32>
    %31 = arith.cmpi sge, %0, %30 : vector<1x256xi32>
    %c32_i32 = arith.constant 32 : i32
    %32 = vector.broadcast %c32_i32 : i32 to vector<1x256xi32>
    %33 = arith.cmpi slt, %0, %32 : vector<1x256xi32>
    %34 = arith.andi %31, %33 : vector<1x256xi1>
    %cst_8 = arith.constant 0.000000e+00 : f32
    %35 = vector.broadcast %cst_8 : f32 to vector<1x256xf32>
    %36 = arith.select %34, %29, %35 : vector<1x256xi1>, vector<1x256xf32>
    %37 = vector.extract_strided_slice %4 {offsets = [0, 4], sizes = [1, 256], strides = [1, 1]} : vector<1x262xf32> to vector<1x256xf32>
    %c-1_i32 = arith.constant -1 : i32
    %38 = vector.broadcast %c-1_i32 : i32 to vector<1x256xi32>
    %39 = arith.cmpi sge, %0, %38 : vector<1x256xi32>
    %c31_i32 = arith.constant 31 : i32
    %40 = vector.broadcast %c31_i32 : i32 to vector<1x256xi32>
    %41 = arith.cmpi slt, %0, %40 : vector<1x256xi32>
    %42 = arith.andi %39, %41 : vector<1x256xi1>
    %cst_9 = arith.constant 0.000000e+00 : f32
    %43 = vector.broadcast %cst_9 : f32 to vector<1x256xf32>
    %44 = arith.select %42, %37, %43 : vector<1x256xi1>, vector<1x256xf32>
    %45 = vector.extract_strided_slice %4 {offsets = [0, 5], sizes = [1, 256], strides = [1, 1]} : vector<1x262xf32> to vector<1x256xf32>
    %c-2_i32 = arith.constant -2 : i32
    %46 = vector.broadcast %c-2_i32 : i32 to vector<1x256xi32>
    %47 = arith.cmpi sge, %0, %46 : vector<1x256xi32>
    %c30_i32 = arith.constant 30 : i32
    %48 = vector.broadcast %c30_i32 : i32 to vector<1x256xi32>
    %49 = arith.cmpi slt, %0, %48 : vector<1x256xi32>
    %50 = arith.andi %47, %49 : vector<1x256xi1>
    %cst_10 = arith.constant 0.000000e+00 : f32
    %51 = vector.broadcast %cst_10 : f32 to vector<1x256xf32>
    %52 = arith.select %50, %45, %51 : vector<1x256xi1>, vector<1x256xf32>
    %53 = vector.extract_strided_slice %4 {offsets = [0, 6], sizes = [1, 256], strides = [1, 1]} : vector<1x262xf32> to vector<1x256xf32>
    %c-3_i32 = arith.constant -3 : i32
    %54 = vector.broadcast %c-3_i32 : i32 to vector<1x256xi32>
    %55 = arith.cmpi sge, %0, %54 : vector<1x256xi32>
    %c29_i32 = arith.constant 29 : i32
    %56 = vector.broadcast %c29_i32 : i32 to vector<1x256xi32>
    %57 = arith.cmpi slt, %0, %56 : vector<1x256xi32>
    %58 = arith.andi %55, %57 : vector<1x256xi1>
    %cst_11 = arith.constant 0.000000e+00 : f32
    %59 = vector.broadcast %cst_11 : f32 to vector<1x256xf32>
    %60 = arith.select %58, %53, %59 : vector<1x256xi1>, vector<1x256xf32>
    %61 = tpu.concatenate %12, %20, %28, %36, %44, %52, %60 in 0 : vector<1x256xf32>, vector<1x256xf32>, vector<1x256xf32>, vector<1x256xf32>, vector<1x256xf32>, vector<1x256xf32>, vector<1x256xf32> -> vector<7x256xf32>
    %cst_12 = arith.constant dense<0.000000e+00> : vector<16x256xf32>
    %62 = tpu.matmul %2, %61, %cst_12 {dimension_numbers = #tpu.dot_dimension_numbers<[1], [0], [0], [1], [0, 0, 1, 1], [], []>} : vector<16x7xf32>, vector<7x256xf32>, vector<16x256xf32> -> vector<16x256xf32>
    %c0_13 = arith.constant 0 : index
    %c0_14 = arith.constant 0 : index
    %63 = vector.load %arg4[%c0_13, %c0_14] : memref<16x1xf32, #tpu.memory_space<vmem>>, vector<16x1xf32>
    %64 = vector.broadcast %63 : vector<16x1xf32> to vector<16x256xf32>
    %65 = arith.addf %62, %64 : vector<16x256xf32>
    %c0_15 = arith.constant 0 : index
    %c0_16 = arith.constant 0 : index
    %66 = vector.load %arg5[%c0_15, %c0_16] : memref<16x80xf32, #tpu.memory_space<vmem>>, vector<16x80xf32>
    %cst_17 = arith.constant 0.000000e+00 : f32
    %67 = vector.broadcast %cst_17 : f32 to vector<16x2xf32>
    %68 = tpu.concatenate %67, %65, %67 in 1 : vector<16x2xf32>, vector<16x256xf32>, vector<16x2xf32> -> vector<16x260xf32>
    %69 = vector.extract_strided_slice %68 {offsets = [0, 0], sizes = [16, 256], strides = [1, 1]} : vector<16x260xf32> to vector<16x256xf32>
    %c2_i32_18 = arith.constant 2 : i32
    %70 = vector.broadcast %c2_i32_18 : i32 to vector<1x256xi32>
    %71 = arith.cmpi sge, %0, %70 : vector<1x256xi32>
    %c34_i32_19 = arith.constant 34 : i32
    %72 = vector.broadcast %c34_i32_19 : i32 to vector<1x256xi32>
    %73 = arith.cmpi slt, %0, %72 : vector<1x256xi32>
    %74 = arith.andi %71, %73 : vector<1x256xi1>
    %cst_20 = arith.constant 0.000000e+00 : f32
    %75 = vector.shape_cast %74 : vector<1x256xi1> to vector<1x256xi1>
    %76 = vector.broadcast %75 : vector<1x256xi1> to vector<16x256xi1>
    %77 = vector.broadcast %cst_20 : f32 to vector<16x256xf32>
    %78 = arith.select %76, %69, %77 : vector<16x256xi1>, vector<16x256xf32>
    %79 = vector.extract_strided_slice %68 {offsets = [0, 1], sizes = [16, 256], strides = [1, 1]} : vector<16x260xf32> to vector<16x256xf32>
    %c1_i32_21 = arith.constant 1 : i32
    %80 = vector.broadcast %c1_i32_21 : i32 to vector<1x256xi32>
    %81 = arith.cmpi sge, %0, %80 : vector<1x256xi32>
    %c33_i32_22 = arith.constant 33 : i32
    %82 = vector.broadcast %c33_i32_22 : i32 to vector<1x256xi32>
    %83 = arith.cmpi slt, %0, %82 : vector<1x256xi32>
    %84 = arith.andi %81, %83 : vector<1x256xi1>
    %cst_23 = arith.constant 0.000000e+00 : f32
    %85 = vector.shape_cast %84 : vector<1x256xi1> to vector<1x256xi1>
    %86 = vector.broadcast %85 : vector<1x256xi1> to vector<16x256xi1>
    %87 = vector.broadcast %cst_23 : f32 to vector<16x256xf32>
    %88 = arith.select %86, %79, %87 : vector<16x256xi1>, vector<16x256xf32>
    %89 = vector.extract_strided_slice %68 {offsets = [0, 2], sizes = [16, 256], strides = [1, 1]} : vector<16x260xf32> to vector<16x256xf32>
    %c0_i32_24 = arith.constant 0 : i32
    %90 = vector.broadcast %c0_i32_24 : i32 to vector<1x256xi32>
    %91 = arith.cmpi sge, %0, %90 : vector<1x256xi32>
    %c32_i32_25 = arith.constant 32 : i32
    %92 = vector.broadcast %c32_i32_25 : i32 to vector<1x256xi32>
    %93 = arith.cmpi slt, %0, %92 : vector<1x256xi32>
    %94 = arith.andi %91, %93 : vector<1x256xi1>
    %cst_26 = arith.constant 0.000000e+00 : f32
    %95 = vector.shape_cast %94 : vector<1x256xi1> to vector<1x256xi1>
    %96 = vector.broadcast %95 : vector<1x256xi1> to vector<16x256xi1>
    %97 = vector.broadcast %cst_26 : f32 to vector<16x256xf32>
    %98 = arith.select %96, %89, %97 : vector<16x256xi1>, vector<16x256xf32>
    %99 = vector.extract_strided_slice %68 {offsets = [0, 3], sizes = [16, 256], strides = [1, 1]} : vector<16x260xf32> to vector<16x256xf32>
    %c-1_i32_27 = arith.constant -1 : i32
    %100 = vector.broadcast %c-1_i32_27 : i32 to vector<1x256xi32>
    %101 = arith.cmpi sge, %0, %100 : vector<1x256xi32>
    %c31_i32_28 = arith.constant 31 : i32
    %102 = vector.broadcast %c31_i32_28 : i32 to vector<1x256xi32>
    %103 = arith.cmpi slt, %0, %102 : vector<1x256xi32>
    %104 = arith.andi %101, %103 : vector<1x256xi1>
    %cst_29 = arith.constant 0.000000e+00 : f32
    %105 = vector.shape_cast %104 : vector<1x256xi1> to vector<1x256xi1>
    %106 = vector.broadcast %105 : vector<1x256xi1> to vector<16x256xi1>
    %107 = vector.broadcast %cst_29 : f32 to vector<16x256xf32>
    %108 = arith.select %106, %99, %107 : vector<16x256xi1>, vector<16x256xf32>
    %109 = vector.extract_strided_slice %68 {offsets = [0, 4], sizes = [16, 256], strides = [1, 1]} : vector<16x260xf32> to vector<16x256xf32>
    %c-2_i32_30 = arith.constant -2 : i32
    %110 = vector.broadcast %c-2_i32_30 : i32 to vector<1x256xi32>
    %111 = arith.cmpi sge, %0, %110 : vector<1x256xi32>
    %c30_i32_31 = arith.constant 30 : i32
    %112 = vector.broadcast %c30_i32_31 : i32 to vector<1x256xi32>
    %113 = arith.cmpi slt, %0, %112 : vector<1x256xi32>
    %114 = arith.andi %111, %113 : vector<1x256xi1>
    %cst_32 = arith.constant 0.000000e+00 : f32
    %115 = vector.shape_cast %114 : vector<1x256xi1> to vector<1x256xi1>
    %116 = vector.broadcast %115 : vector<1x256xi1> to vector<16x256xi1>
    %117 = vector.broadcast %cst_32 : f32 to vector<16x256xf32>
    %118 = arith.select %116, %109, %117 : vector<16x256xi1>, vector<16x256xf32>
    %119 = tpu.concatenate %78, %88, %98, %108, %118 in 0 : vector<16x256xf32>, vector<16x256xf32>, vector<16x256xf32>, vector<16x256xf32>, vector<16x256xf32> -> vector<80x256xf32>
    %cst_33 = arith.constant dense<0.000000e+00> : vector<16x256xf32>
    %120 = tpu.matmul %66, %119, %cst_33 {dimension_numbers = #tpu.dot_dimension_numbers<[1], [0], [0], [1], [0, 0, 1, 1], [], []>} : vector<16x80xf32>, vector<80x256xf32>, vector<16x256xf32> -> vector<16x256xf32>
    %c0_34 = arith.constant 0 : index
    %c0_35 = arith.constant 0 : index
    %121 = vector.load %arg6[%c0_34, %c0_35] : memref<16x1xf32, #tpu.memory_space<vmem>>, vector<16x1xf32>
    %122 = vector.broadcast %121 : vector<16x1xf32> to vector<16x256xf32>
    %123 = arith.addf %120, %122 : vector<16x256xf32>
    %c0_36 = arith.constant 0 : index
    %c0_37 = arith.constant 0 : index
    %124 = vector.load %arg7[%c0_36, %c0_37] : memref<16x48xf32, #tpu.memory_space<vmem>>, vector<16x48xf32>
    %cst_38 = arith.constant 0.000000e+00 : f32
    %125 = vector.broadcast %cst_38 : f32 to vector<16x1xf32>
    %126 = tpu.concatenate %125, %123, %125 in 1 : vector<16x1xf32>, vector<16x256xf32>, vector<16x1xf32> -> vector<16x258xf32>
    %127 = vector.extract_strided_slice %126 {offsets = [0, 0], sizes = [16, 256], strides = [1, 1]} : vector<16x258xf32> to vector<16x256xf32>
    %c1_i32_39 = arith.constant 1 : i32
    %128 = vector.broadcast %c1_i32_39 : i32 to vector<1x256xi32>
    %129 = arith.cmpi sge, %0, %128 : vector<1x256xi32>
    %c33_i32_40 = arith.constant 33 : i32
    %130 = vector.broadcast %c33_i32_40 : i32 to vector<1x256xi32>
    %131 = arith.cmpi slt, %0, %130 : vector<1x256xi32>
    %132 = arith.andi %129, %131 : vector<1x256xi1>
    %cst_41 = arith.constant 0.000000e+00 : f32
    %133 = vector.shape_cast %132 : vector<1x256xi1> to vector<1x256xi1>
    %134 = vector.broadcast %133 : vector<1x256xi1> to vector<16x256xi1>
    %135 = vector.broadcast %cst_41 : f32 to vector<16x256xf32>
    %136 = arith.select %134, %127, %135 : vector<16x256xi1>, vector<16x256xf32>
    %137 = vector.extract_strided_slice %126 {offsets = [0, 1], sizes = [16, 256], strides = [1, 1]} : vector<16x258xf32> to vector<16x256xf32>
    %c0_i32_42 = arith.constant 0 : i32
    %138 = vector.broadcast %c0_i32_42 : i32 to vector<1x256xi32>
    %139 = arith.cmpi sge, %0, %138 : vector<1x256xi32>
    %c32_i32_43 = arith.constant 32 : i32
    %140 = vector.broadcast %c32_i32_43 : i32 to vector<1x256xi32>
    %141 = arith.cmpi slt, %0, %140 : vector<1x256xi32>
    %142 = arith.andi %139, %141 : vector<1x256xi1>
    %cst_44 = arith.constant 0.000000e+00 : f32
    %143 = vector.shape_cast %142 : vector<1x256xi1> to vector<1x256xi1>
    %144 = vector.broadcast %143 : vector<1x256xi1> to vector<16x256xi1>
    %145 = vector.broadcast %cst_44 : f32 to vector<16x256xf32>
    %146 = arith.select %144, %137, %145 : vector<16x256xi1>, vector<16x256xf32>
    %147 = vector.extract_strided_slice %126 {offsets = [0, 2], sizes = [16, 256], strides = [1, 1]} : vector<16x258xf32> to vector<16x256xf32>
    %c-1_i32_45 = arith.constant -1 : i32
    %148 = vector.broadcast %c-1_i32_45 : i32 to vector<1x256xi32>
    %149 = arith.cmpi sge, %0, %148 : vector<1x256xi32>
    %c31_i32_46 = arith.constant 31 : i32
    %150 = vector.broadcast %c31_i32_46 : i32 to vector<1x256xi32>
    %151 = arith.cmpi slt, %0, %150 : vector<1x256xi32>
    %152 = arith.andi %149, %151 : vector<1x256xi1>
    %cst_47 = arith.constant 0.000000e+00 : f32
    %153 = vector.shape_cast %152 : vector<1x256xi1> to vector<1x256xi1>
    %154 = vector.broadcast %153 : vector<1x256xi1> to vector<16x256xi1>
    %155 = vector.broadcast %cst_47 : f32 to vector<16x256xf32>
    %156 = arith.select %154, %147, %155 : vector<16x256xi1>, vector<16x256xf32>
    %157 = tpu.concatenate %136, %146, %156 in 0 : vector<16x256xf32>, vector<16x256xf32>, vector<16x256xf32> -> vector<48x256xf32>
    %cst_48 = arith.constant dense<0.000000e+00> : vector<16x256xf32>
    %158 = tpu.matmul %124, %157, %cst_48 {dimension_numbers = #tpu.dot_dimension_numbers<[1], [0], [0], [1], [0, 0, 1, 1], [], []>} : vector<16x48xf32>, vector<48x256xf32>, vector<16x256xf32> -> vector<16x256xf32>
    %c0_49 = arith.constant 0 : index
    %c0_50 = arith.constant 0 : index
    %159 = vector.load %arg8[%c0_49, %c0_50] : memref<16x1xf32, #tpu.memory_space<vmem>>, vector<16x1xf32>
    %160 = vector.broadcast %159 : vector<16x1xf32> to vector<16x256xf32>
    %161 = arith.addf %158, %160 : vector<16x256xf32>
    %cst_51 = arith.constant 0.000000e+00 : f32
    %162 = vector.broadcast %cst_51 : f32 to vector<16x256xf32>
    %163 = arith.maximumf %161, %162 : vector<16x256xf32>
    %c0_52 = arith.constant 0 : index
    %c0_53 = arith.constant 0 : index
    %164 = vector.load %arg9[%c0_52, %c0_53] : memref<16x256xf32, #tpu.memory_space<vmem>>, vector<16x256xf32>
    tpu.vector_store %arg9[%c0_52, %c0_53], %163 {strides = array<i32>} : memref<16x256xf32, #tpu.memory_space<vmem>>, vector<16x256xf32>,
    return
  }
  func.func @transform_0(%arg0: i32) -> (i32, i32) {
    %c0_i32 = arith.constant 0 : i32
    %c0_i32_0 = arith.constant 0 : i32
    return %c0_i32, %arg0 : i32, i32
  }
  func.func @transform_1(%arg0: i32) -> (i32, i32) {
    %c0_i32 = arith.constant 0 : i32
    %c0_i32_0 = arith.constant 0 : i32
    %c0_i32_1 = arith.constant 0 : i32
    return %c0_i32, %c0_i32_0 : i32, i32
  }
  func.func @transform_2(%arg0: i32) -> (i32, i32) {
    %c0_i32 = arith.constant 0 : i32
    %c0_i32_0 = arith.constant 0 : i32
    %c0_i32_1 = arith.constant 0 : i32
    return %c0_i32, %c0_i32_0 : i32, i32
  }
  func.func @transform_3(%arg0: i32) -> (i32, i32) {
    %c0_i32 = arith.constant 0 : i32
    %c0_i32_0 = arith.constant 0 : i32
    %c0_i32_1 = arith.constant 0 : i32
    return %c0_i32, %c0_i32_0 : i32, i32
  }
  func.func @transform_4(%arg0: i32) -> (i32, i32) {
    %c0_i32 = arith.constant 0 : i32
    %c0_i32_0 = arith.constant 0 : i32
    %c0_i32_1 = arith.constant 0 : i32
    return %c0_i32, %c0_i32_0 : i32, i32
  }
  func.func @transform_5(%arg0: i32) -> (i32, i32) {
    %c0_i32 = arith.constant 0 : i32
    %c0_i32_0 = arith.constant 0 : i32
    %c0_i32_1 = arith.constant 0 : i32
    return %c0_i32, %c0_i32_0 : i32, i32
  }
  func.func @transform_6(%arg0: i32) -> (i32, i32) {
    %c0_i32 = arith.constant 0 : i32
    %c0_i32_0 = arith.constant 0 : i32
    %c0_i32_1 = arith.constant 0 : i32
    return %c0_i32, %c0_i32_0 : i32, i32
  }
  func.func @transform_7(%arg0: i32) -> (i32, i32) {
    %c0_i32 = arith.constant 0 : i32
    %c0_i32_0 = arith.constant 0 : i32
    %c0_i32_1 = arith.constant 0 : i32
    return %c0_i32, %c0_i32_0 : i32, i32
  }
  func.func @transform_8(%arg0: i32) -> (i32, i32) {
    %c0_i32 = arith.constant 0 : i32
    %c0_i32_0 = arith.constant 0 : i32
    return %c0_i32, %arg0 : i32, i32
  }
}

module attributes {stable_mosaic.version = 11 : i64} {
  func.func @_gating_kernel(%arg0: i32, %arg1: memref<8x32xf32, #tpu.memory_space<vmem>>, %arg2: memref<32x64xf32, #tpu.memory_space<vmem>>, %arg3: memref<1x64xf32, #tpu.memory_space<vmem>>, %arg4: memref<64x64xf32, #tpu.memory_space<vmem>>, %arg5: memref<1x64xf32, #tpu.memory_space<vmem>>, %arg6: memref<64x32xf32, #tpu.memory_space<vmem>>, %arg7: memref<1x32xf32, #tpu.memory_space<vmem>>, %arg8: memref<8x32xf32, #tpu.memory_space<vmem>>) attributes {dimension_semantics = [#tpu.dimension_semantics<parallel>], iteration_bounds = array<i64: 2>, scalar_prefetch = 0 : i64, scratch_operands = 0 : i64, tpu.core_type = #tpu.core_type<tc>, window_params = [{transform_indices = @transform_0, window_bounds = array<i64: 8, 32>}, {pipeline_mode = #tpu.pipeline_mode<synchronous>, transform_indices = @transform_1, window_bounds = array<i64: 32, 64>}, {pipeline_mode = #tpu.pipeline_mode<synchronous>, transform_indices = @transform_2, window_bounds = array<i64: 1, 64>}, {pipeline_mode = #tpu.pipeline_mode<synchronous>, transform_indices = @transform_3, window_bounds = array<i64: 64, 64>}, {pipeline_mode = #tpu.pipeline_mode<synchronous>, transform_indices = @transform_4, window_bounds = array<i64: 1, 64>}, {pipeline_mode = #tpu.pipeline_mode<synchronous>, transform_indices = @transform_5, window_bounds = array<i64: 64, 32>}, {pipeline_mode = #tpu.pipeline_mode<synchronous>, transform_indices = @transform_6, window_bounds = array<i64: 1, 32>}, {transform_indices = @transform_7, window_bounds = array<i64: 8, 32>}]} {
    %c0 = arith.constant 0 : index
    %c0_0 = arith.constant 0 : index
    %0 = vector.load %arg1[%c0, %c0_0] : memref<8x32xf32, #tpu.memory_space<vmem>>, vector<8x32xf32>
    %c0_1 = arith.constant 0 : index
    %c0_2 = arith.constant 0 : index
    %1 = vector.load %arg2[%c0_1, %c0_2] : memref<32x64xf32, #tpu.memory_space<vmem>>, vector<32x64xf32>
    %cst = arith.constant dense<0.000000e+00> : vector<8x64xf32>
    %2 = tpu.matmul %0, %1, %cst {dimension_numbers = #tpu.dot_dimension_numbers<[1], [0], [0], [1], [0, 0, 1, 1], [], []>} : vector<8x32xf32>, vector<32x64xf32>, vector<8x64xf32> -> vector<8x64xf32>
    %c0_3 = arith.constant 0 : index
    %c0_4 = arith.constant 0 : index
    %3 = vector.load %arg3[%c0_3, %c0_4] : memref<1x64xf32, #tpu.memory_space<vmem>>, vector<1x64xf32>
    %4 = vector.broadcast %3 : vector<1x64xf32> to vector<8x64xf32>
    %5 = arith.addf %2, %4 : vector<8x64xf32>
    %cst_5 = arith.constant 0.000000e+00 : f32
    %6 = vector.broadcast %cst_5 : f32 to vector<8x64xf32>
    %7 = arith.maximumf %5, %6 : vector<8x64xf32>
    %c0_6 = arith.constant 0 : index
    %c0_7 = arith.constant 0 : index
    %8 = vector.load %arg4[%c0_6, %c0_7] : memref<64x64xf32, #tpu.memory_space<vmem>>, vector<64x64xf32>
    %cst_8 = arith.constant dense<0.000000e+00> : vector<8x64xf32>
    %9 = tpu.matmul %7, %8, %cst_8 {dimension_numbers = #tpu.dot_dimension_numbers<[1], [0], [0], [1], [0, 0, 1, 1], [], []>} : vector<8x64xf32>, vector<64x64xf32>, vector<8x64xf32> -> vector<8x64xf32>
    %c0_9 = arith.constant 0 : index
    %c0_10 = arith.constant 0 : index
    %10 = vector.load %arg5[%c0_9, %c0_10] : memref<1x64xf32, #tpu.memory_space<vmem>>, vector<1x64xf32>
    %11 = vector.broadcast %10 : vector<1x64xf32> to vector<8x64xf32>
    %12 = arith.addf %9, %11 : vector<8x64xf32>
    %cst_11 = arith.constant 0.000000e+00 : f32
    %13 = vector.broadcast %cst_11 : f32 to vector<8x64xf32>
    %14 = arith.maximumf %12, %13 : vector<8x64xf32>
    %c0_12 = arith.constant 0 : index
    %c0_13 = arith.constant 0 : index
    %15 = vector.load %arg6[%c0_12, %c0_13] : memref<64x32xf32, #tpu.memory_space<vmem>>, vector<64x32xf32>
    %cst_14 = arith.constant dense<0.000000e+00> : vector<8x32xf32>
    %16 = tpu.matmul %14, %15, %cst_14 {dimension_numbers = #tpu.dot_dimension_numbers<[1], [0], [0], [1], [0, 0, 1, 1], [], []>} : vector<8x64xf32>, vector<64x32xf32>, vector<8x32xf32> -> vector<8x32xf32>
    %c0_15 = arith.constant 0 : index
    %c0_16 = arith.constant 0 : index
    %17 = vector.load %arg7[%c0_15, %c0_16] : memref<1x32xf32, #tpu.memory_space<vmem>>, vector<1x32xf32>
    %18 = vector.broadcast %17 : vector<1x32xf32> to vector<8x32xf32>
    %19 = arith.addf %16, %18 : vector<8x32xf32>
    %20 = arith.negf %19 : vector<8x32xf32>
    %21 = math.exp %20 : vector<8x32xf32>
    %cst_17 = arith.constant 1.000000e+00 : f32
    %22 = vector.broadcast %cst_17 : f32 to vector<8x32xf32>
    %23 = arith.addf %22, %21 : vector<8x32xf32>
    %24 = arith.divf %22, %23 : vector<8x32xf32>
    %25 = arith.mulf %0, %24 : vector<8x32xf32>
    %c0_18 = arith.constant 0 : index
    %c0_19 = arith.constant 0 : index
    %26 = vector.load %arg8[%c0_18, %c0_19] : memref<8x32xf32, #tpu.memory_space<vmem>>, vector<8x32xf32>
    tpu.vector_store %arg8[%c0_18, %c0_19], %25 {strides = array<i32>} : memref<8x32xf32, #tpu.memory_space<vmem>>, vector<8x32xf32>,
    return
  }
  func.func @transform_0(%arg0: i32) -> (i32, i32) {
    %c0_i32 = arith.constant 0 : i32
    %c0_i32_0 = arith.constant 0 : i32
    return %arg0, %c0_i32 : i32, i32
  }
  func.func @transform_1(%arg0: i32) -> (i32, i32) {
    %c0_i32 = arith.constant 0 : i32
    %c0_i32_0 = arith.constant 0 : i32
    %c0_i32_1 = arith.constant 0 : i32
    return %c0_i32, %c0_i32_0 : i32, i32
  }
  func.func @transform_2(%arg0: i32) -> (i32, i32) {
    %c0_i32 = arith.constant 0 : i32
    %c0_i32_0 = arith.constant 0 : i32
    %c0_i32_1 = arith.constant 0 : i32
    return %c0_i32, %c0_i32_0 : i32, i32
  }
  func.func @transform_3(%arg0: i32) -> (i32, i32) {
    %c0_i32 = arith.constant 0 : i32
    %c0_i32_0 = arith.constant 0 : i32
    %c0_i32_1 = arith.constant 0 : i32
    return %c0_i32, %c0_i32_0 : i32, i32
  }
  func.func @transform_4(%arg0: i32) -> (i32, i32) {
    %c0_i32 = arith.constant 0 : i32
    %c0_i32_0 = arith.constant 0 : i32
    %c0_i32_1 = arith.constant 0 : i32
    return %c0_i32, %c0_i32_0 : i32, i32
  }
  func.func @transform_5(%arg0: i32) -> (i32, i32) {
    %c0_i32 = arith.constant 0 : i32
    %c0_i32_0 = arith.constant 0 : i32
    %c0_i32_1 = arith.constant 0 : i32
    return %c0_i32, %c0_i32_0 : i32, i32
  }
  func.func @transform_6(%arg0: i32) -> (i32, i32) {
    %c0_i32 = arith.constant 0 : i32
    %c0_i32_0 = arith.constant 0 : i32
    %c0_i32_1 = arith.constant 0 : i32
    return %c0_i32, %c0_i32_0 : i32, i32
  }
  func.func @transform_7(%arg0: i32) -> (i32, i32) {
    %c0_i32 = arith.constant 0 : i32
    %c0_i32_0 = arith.constant 0 : i32
    return %arg0, %c0_i32 : i32, i32
  }
}

</mosaic_0001>

<bundles_post_ra>
// kernel: attention_pallas.2
= control target key start
LH: loop header
LB: loop body
LE: loop exit
PB: predicated region body
PF: predicated region fallthrough
CT: control target
= control target key end

     0   :  { %s784_s24 = smov 0   ;;  %s882_s0 = inlined_call_operand.vmem [shape: f32[16,32], index: 0, kind: input, shape index: {}]   ;;  %s883_s1 = inlined_call_operand.vmem [shape: f32[32,64], index: 1, kind: input, shape index: {}]   ;;  %s884_s2 = inlined_call_operand.vmem [shape: f32[1,64], index: 2, kind: input, shape index: {}]   ;;  %s885_s3 = inlined_call_operand.vmem [shape: f32[64,64], index: 3, kind: input, shape index: {}]   ;;  %s886_s4 = inlined_call_operand.vmem [shape: f32[1,64], index: 4, kind: input, shape index: {}]   ;;  %s887_s5 = inlined_call_operand.vmem [shape: f32[64,32], index: 5, kind: input, shape index: {}]   ;;  %s888_s6 = inlined_call_operand.vmem [shape: f32[1,32], index: 6, kind: input, shape index: {}]   ;;  %s889_s7 = inlined_call_operand.vmem [shape: f32[16,32], index: 7, kind: output, shape index: {}]  }
   0x1 LB: > { %s600_s25 = sadd.s32 4294967295, %s739_s24   ;;  %p604_p0 = scmp.ge.s32.totalorder %s739_s24, 1  ;;  %s739_s24 = sphi %s784_s24, %s17_s24  }
   0x2   : > { %p236_p1 = scmp.lt.s32.totalorder %s739_s24, 3 }
   0x4   : > { %p237_p2 = pnand %p604_p0, %p236_p1 }
   0x5   : > { %v275_v0 = vld [vmem:[%s883_s1] sm:$0xff] (!%p237_p2)  ;;  %v276_v1 = vld [vmem:[%s883_s1 + $0x8] sm:$0xff] (!%p237_p2)  ;;  %v277_v2 = vld [vmem:[%s883_s1 + $0x10] sm:$0xff] (!%p237_p2)  ;;  %v741_v3 = vmov (!%p237_p2), 0.0|0.0   ;;  %vm742_vm0 = vmmov (!%p237_p2), 0   ;;  %v743_v6 = vmov (!%p237_p2), 0.0  }
   0x6   : > { %240 = sbr.rel (%p237_p2) target bundleno = 692 (0x2b4), region = 48  ;;  %688 = vmatprep.subr.bf16.mxu0 (!%p237_p2), %v741_v3  ;;  %v689_v4 = vpack.c.bf16 (!%p237_p2), %v276_v1, %v275_v0  ;;  %v278_v5 = vld [vmem:[%s883_s1 + $0x18] sm:$0xff] (!%p237_p2)  ;;  %647 = vmatprep.mubr.msk.f32.mxu0 (!%p237_p2), %vm742_vm0, %v743_v6  ;;  %p266_p3 = scmp.lt.s32.totalorder (!%p237_p2), %s600_s25, 1  ;;  %v361_v7 = vld [vmem:[%s885_s3] sm:$0xff] (!%p237_p2)  ;;  %v362_v8 = vld [vmem:[%s885_s3 + $0x8] sm:$0xff] (!%p237_p2)  ;;  %vm286_vm1 = vcmask (!%p237_p2), 261120  }
   0x7   : > { %694 = vmatprep.subr.bf16.mxu1 (!%p237_p2), %v741_v3  ;;  %v695_v9 = vpack.c.bf16 (!%p237_p2), %v362_v8, %v361_v7  ;;  %v363_v10 = vld [vmem:[%s885_s3 + $0x10] sm:$0xff] (!%p237_p2)  ;;  %v364_v11 = vld [vmem:[%s885_s3 + $0x18] sm:$0xff] (!%p237_p2)  ;;  %666 = vmatprep.mubr.msk.f32.mxu1 (!%p237_p2), %vm742_vm0, %v743_v6  ;;  %v692_v12 = vpack.c.bf16 (!%p237_p2), %v278_v5, %v277_v2  ;;  %v365_v14 = vld [vmem:[%s885_s3 + $0x20] sm:$0xff] (!%p237_p2)  ;;  %vm376_vm2 = vcmask (!%p237_p2), 523264  }
   0x8   : > { %690 = vmatpush3.bf16.msra.mxu0 (!%p237_p2), %v689_v4  ;;  %v698_v13 = vpack.c.bf16 (!%p237_p2), %v364_v11, %v363_v10  ;;  %v366_v15 = vld [vmem:[%s885_s3 + $0x28] sm:$0xff] (!%p237_p2)  ;;  %v367_v18 = vld [vmem:[%s885_s3 + $0x30] sm:$0xff] (!%p237_p2)  ;;  %v368_v19 = vld [vmem:[%s885_s3 + $0x38] sm:$0xff] (!%p237_p2) }
   0x9   : > { %691 = vmatprep.subr.bf16.mxu0 (!%p237_p2), %v741_v3  ;;  %696 = vmatpush3.bf16.msra.mxu1 (!%p237_p2), %v695_v9  ;;  %v701_v17 = vpack.c.bf16 (!%p237_p2), %v366_v15, %v365_v14  ;;  %v704_v20 = vpack.c.bf16 (!%p237_p2), %v368_v19, %v367_v18  ;;  %v451_v21 = vld [vmem:[%s887_s5] sm:$0xff] (!%p237_p2)  ;;  %v452_v22 = vld [vmem:[%s887_s5 + $0x8] sm:$0xff] (!%p237_p2)  ;;  %v453_v23 = vld [vmem:[%s887_s5 + $0x10] sm:$0xff] (!%p237_p2) }
   0xa   : > { %697 = vmatprep.subr.bf16.mxu1 (!%p237_p2), %v741_v3  ;;  %v707_v24 = vpack.c.bf16 (!%p237_p2), %v452_v22, %v451_v21  ;;  %v454_v25 = vld [vmem:[%s887_s5 + $0x18] sm:$0xff] (!%p237_p2)  ;;  %v455_v27 = vld [vmem:[%s887_s5 + $0x20] sm:$0xff] (!%p237_p2)  ;;  %v456_v28 = vld [vmem:[%s887_s5 + $0x28] sm:$0xff] (!%p237_p2) }
   0xb   : > { %v710_v26 = vpack.c.bf16 (!%p237_p2), %v454_v25, %v453_v23  ;;  %v713_v29 = vpack.c.bf16 (!%p237_p2), %v456_v28, %v455_v27  ;;  %v607_v30 = vld [vmem:[%s884_s2] ss:$0 sm:$0xff] (!%p237_p2)  ;;  %v457_v35 = vld [vmem:[%s887_s5 + $0x30] sm:$0xff] (!%p237_p2)  ;;  %v458_v36 = vld [vmem:[%s887_s5 + $0x38] sm:$0xff] (!%p237_p2) }
   0xc   : > { %693 = vmatpush3.bf16.msra.mxu0 (!%p237_p2), %v692_v12  ;;  %v716_v37 = vpack.c.bf16 (!%p237_p2), %v458_v36, %v457_v35  ;;  %v609_v38 = vld [vmem:[%s886_s4] ss:$0 sm:$0xff] (!%p237_p2) }
   0xd   : > { %s891_s25 = smov (!%p266_p3, %s600_s25), 1  ;;  %699 = vmatpush3.bf16.msra.mxu1 %v698_v13  ;;  %706 = vmatprep.subr.bf16.mxu0 %v741_v3  ;;  %v611_v43 = vld [vmem:[%s888_s6] ss:$0 sm:$0xff] }
   0xe   : > { %s605_s19 = sshll.u32 %s891_s25, 3  ;;  %700 = vmatprep.subr.bf16.mxu1 %v741_v3 }
   0xf   : > { %s269_s28 = scalar_lea.vmem %s882_s0, %s605_s19  ;;  %s273_s14 = scalar_lea.vmem %s889_s7, %s605_s19 }
  0x10   : > { %v274_v16 = vld [vmem:[%s269_s28] sm:$0xff] }
  0x11   : > { %648 = vmatmul.mubr.msk.f32.vlgmr.msra.gmra.mrb[0].mxu0 %vm286_vm1, %v274_v16  ;;  %702 = vmatpush3.bf16.msra.mxu1 %v701_v17 }
  0x12   : > { %685 = vmatprep.mubr.msk.f32.mxu0 %vm742_vm0, %v743_v6  ;;  %703 = vmatprep.subr.bf16.mxu1 %v741_v3 }
  0x13   : > { %708 = vmatpush3.bf16.msra.mxu0 %v707_v24 }
  0x14   : > { %709 = vmatprep.subr.bf16.mxu0 %v741_v3 }
  0x15   : > { %705 = vmatpush3.bf16.msra.mxu1 %v704_v20 }
  0x17   : > { %711 = vmatpush3.bf16.msra.mxu0 %v710_v26 }
  0x18   : > { %712 = vmatprep.subr.bf16.mxu0 %v741_v3 }
  0x1b   : > { %714 = vmatpush3.bf16.msra.mxu0 %v713_v29 }
  0x1c   : > { %715 = vmatprep.subr.bf16.mxu0 %v741_v3 }
  0x1f   : > { %717 = vmatpush3.bf16.msra.mxu0 %v716_v37 }
  0xe4   : > { %v356_v31 = vpop.f32.mrb[0].mxu0 }
  0xe5   : > { %v357_v32 = vadd.f32 %v607_v30, %v356_v31  ;;  %v649_v33 = vpop.f32.mrb[1].mxu0 }
  0xe7   : > { %v360_v34 = vmax.f32 %v357_v32, 0.0 }
  0xe9   : > { %667 = vmatmul.mubr.msk.f32.vlgmr.msra.gmra.mrb[0].mxu1 %vm376_vm2, %v360_v34 }
 0x1bc   : > { %v446_v39 = vpop.f32.mrb[0].mxu1 }
 0x1bd   : > { %v447_v40 = vadd.f32 %v609_v38, %v446_v39  ;;  %v668_v41 = vpop.f32.mrb[1].mxu1 }
 0x1bf   : > { %v450_v42 = vmax.f32 %v447_v40, 0.0 }
 0x1c1   : > { %686 = vmatmul.mubr.msk.f32.vlgmr.msra.gmra.mrb[2].mxu0 %vm376_vm2, %v450_v42 }
 0x294   : > { %v535_v44 = vpop.f32.mrb[2].mxu0 }
 0x295   : > { %v536_v45 = vadd.f32 %v611_v43, %v535_v44  ;;  %v687_v46 = vpop.f32.mrb[3].mxu0 }
 0x297   : > { %v613_v47 = vmul.f32 -1.442695, %v536_v45 }
 0x299   : > { %729 = vpow2.f32 %v613_v47 }
 0x2a3   : > { %v730_v48 = vpop.eup %729 }
 0x2a4   : > { %v542_v49 = vadd.f32 1.0, %v730_v48 }
 0x2a6   : > { %731 = vrcp.f32 %v542_v49 }
 0x2b0   : > { %v732_v50 = vpop.eup %731 }
 0x2b1   : > { %v545_v51 = vmul.f32 %v732_v50, %v274_v16 }
 0x2b3   : > { %546 = vst.msk [vmem:[%s273_s14] sm:$0xff] %vm286_vm1, %v545_v51 }
 0x2b4 PF: > { %s17_s24 = sadd.s32 1, %s739_s24  }
 0x2b5   : > { %p14_p4 = scmp.ge.s32.totalorder %s17_s24, 4  }
 0x2b7   :  { %16 = sbr.rel (!%p14_p4) target bundleno = 1 (0x1), region = 78 }

// kernel: attention_pallas.3
= control target key start
LH: loop header
LB: loop body
LE: loop exit
PB: predicated region body
PF: predicated region fallthrough
CT: control target
= control target key end

     0   :  { %s1497_s27 = smov 0   ;;  %s1499_s28 = smov 0   ;;  %s1884_s0 = inlined_call_operand.vmem [shape: f32[1,512], index: 0, kind: input, shape index: {}]   ;;  %s1885_s1 = inlined_call_operand.vmem [shape: s32[1,256], index: 1, kind: input, shape index: {}]   ;;  %s1886_s2 = inlined_call_operand.vmem [shape: f32[16,7], index: 2, kind: input, shape index: {}]   ;;  %s1887_s3 = inlined_call_operand.vmem [shape: f32[16,1], index: 3, kind: input, shape index: {}]   ;;  %s1888_s4 = inlined_call_operand.vmem [shape: f32[16,80], index: 4, kind: input, shape index: {}]   ;;  %s1889_s5 = inlined_call_operand.vmem [shape: f32[16,1], index: 5, kind: input, shape index: {}]   ;;  %s1890_s6 = inlined_call_operand.vmem [shape: f32[16,48], index: 6, kind: input, shape index: {}]   ;;  %s1891_s7 = inlined_call_operand.vmem [shape: f32[16,1], index: 7, kind: input, shape index: {}]   ;;  %s1892_s8 = inlined_call_operand.vmem [shape: f32[16,512], index: 8, kind: output, shape index: {}]  }
   0x1   :  { %s1501_s29 = smov 0  }
   0x2 LB: > { %s1510_s30 = sadd.s32 4294967295, %s1438_s29   ;;  %s1512_s9 = sadd.s32 1, %s1438_s29   ;;  %s1438_s29 = sphi %s1501_s29, %s1952_s29   ;;  %s1434_s28 = sphi %s1499_s28, %s1951_s28   ;;  %s1430_s27 = sphi %s1497_s27, %s1950_s27  }
   0x3   : > { %s195_s10 = ssub.s32 %s1438_s29, %s1512_s9  ;;  %s198_s11 = sadd.s32 1, %s1434_s28 }
   0x4   : > { %p196_p0 = scmp.eq.s32.totalorder %s195_s10, 0  ;;  %p208_p1 = scmp.ne.s32.totalorder %s1434_s28, %s1430_s27 }
   0x5   : > { %p209_p2 = scmp.eq.s32.totalorder %s1510_s30, 1  ;;  %p1171_p3 = scmp.ge.s32.totalorder %s1438_s29, 1 }
   0x6   : > { %s1520_s12 = scalar_select %p196_p0, %s1434_s28, %s198_s11  }
   0x7   : > { %p1522_p4 = por %p209_p2, %p208_p1  ;;  %p262_p5 = scmp.lt.s32.totalorder %s1438_s29, 3 }
   0x9   : > { %p263_p6 = pnand %p1171_p3, %p262_p5 }
   0xa   : > { %s1173_s14 = sshll.u32 (!%p263_p6), %s1510_s30, 1  ;;  %v305_v0 = vlaneseq (!%p263_p6)  ;;  %s1440_s18 = smov (!%p263_p6), 3   ;;  %v1441_v7 = vmov (!%p263_p6), 0   ;;  %v1442_v8 = vmov (!%p263_p6), 1966171168   ;;  %vm317_vm0 = vcmask (!%p263_p6), 23552  }
   0xb   : > { %266 = sbr.rel (%p263_p6) target bundleno = 1470 (0x5be), region = 52  ;;  %p295_p7 = scmp.lt.s32.totalorder (!%p263_p6), %s1173_s14, 3  ;;  %1304 = vset.pattern.permute.xlu0 (!%p263_p6), %v1441_v7  ;;  %1305 = vset.pattern.permute.xlu1 (!%p263_p6), %v1441_v7  ;;  %v329_v9 = vunpack.c.l.s4 (!%p263_p6), %v1442_v8  ;;  %v1448_v23 = vmov (!%p263_p6), 0.0   ;;  %v515_v24 = vld [vmem:[%s1887_s3] sm:$0xff] (!%p263_p6)  ;;  %v516_v25 = vld [vmem:[%s1887_s3 + $0x8] sm:$0xff] (!%p263_p6)  ;;  %vm1893_vm6 = vcmask (!%p263_p6), 1039360  }
   0xc   : > { %v306_v1 = vshrl.u32 (!%p263_p6), %v305_v0, 7  ;;  %s1443_s19 = smov (!%p263_p6), 125   ;;  %s1444_s20 = smov (!%p263_p6), 127   ;;  %605 = vmatprep.mubr.f32.mxu0 (!%p263_p6), %v1448_v23  ;;  %887 = vmatprep.mubr.f32.mxu1 (!%p263_p6), %v1448_v23  ;;  %v1553_v26 = vld [vmem:[%s1885_s1] sm:$0x3] (!%p263_p6)  ;;  %vm1894_vm10 = vcmask (!%p263_p6), 1022976  }
   0xd   : > { %v330_v11 = vunpack.c.0.s8 (!%p263_p6), %v329_v9  ;;  %s1445_s21 = smov (!%p263_p6), 123   ;;  %s1446_s22 = smov (!%p263_p6), 126   ;;  %vm323_vm1 = vcmp.ge.s32.totalorder (!%p263_p6), %v1553_v26, 3  ;;  %vm324_vm2 = vcmp.lt.s32.totalorder (!%p263_p6), %v1553_v26, 35  ;;  %vm344_vm3 = vcmp.ge.s32.totalorder (!%p263_p6), %v1553_v26, 2 }
   0xe   : > { %v1527_v2 = vsub.s32 (!%p263_p6), 0, %v306_v1  ;;  %v1532_v3 = vsub.s32 (!%p263_p6), 1, %v306_v1  ;;  %s1447_s23 = smov (!%p263_p6), 124   ;;  %s1449_s24 = smov (!%p263_p6), 122   ;;  %vm345_vm4 = vcmp.lt.s32.totalorder (!%p263_p6), %v1553_v26, 34  ;;  %vm325_vm5 = vmand (!%p263_p6), %vm323_vm1, %vm324_vm2  ;;  %vm380_vm8 = vcmp.ge.s32.totalorder (!%p263_p6), %v1553_v26, 0 }
   0xf   : > { %v333_v12 = vsub.s32 (!%p263_p6), %v330_v11, %v306_v1  ;;  %vm1559_vm7 = vmand (!%p263_p6), %vm344_vm3, %vm345_vm4  ;;  %vm381_vm9 = vcmp.lt.s32.totalorder (!%p263_p6), %v1553_v26, 32  ;;  %vm400_vm12 = vcmp.ge.s32.totalorder (!%p263_p6), %v1553_v26, 4294967294  ;;  %vm370_vm13 = vcmp.ge.s32.totalorder (!%p263_p6), %v1553_v26, 1  ;;  %s291_s25 = sand.u32 (!%p263_p6), 1, %s1430_s27  }
  0x10   : > { %vm371_vm14 = vcmp.lt.s32.totalorder (!%p263_p6), %v1553_v26, 33  ;;  %vm401_vm15 = vcmp.lt.s32.totalorder (!%p263_p6), %v1553_v26, 30  ;;  %vm1572_vm1 = vmand (!%p263_p6), %vm380_vm8, %vm381_vm9  ;;  %vm1895_vm2 = vcmask (!%p263_p6), 1031168   ;;  %vm500_vm3 = vcmask (!%p263_p6), 1041408   ;;  %s1172_s26 = sshll.u32 (!%p263_p6), %s291_s25, 5 }
  0x11   : > { %vm390_vm4 = vcmp.ge.s32.totalorder (!%p263_p6), %v1553_v26, 4294967295  ;;  %vm396_vm11 = vcmask (!%p263_p6), 1014784   ;;  %vm503_vm8 = vcmask (!%p263_p6), 1042432   ;;  %vm410_vm9 = vcmp.ge.s32.totalorder (!%p263_p6), %v1553_v26, 4294967293  ;;  %s293_s29 = scalar_lea.vmem (!%p263_p6), [#allocation2], %s1172_s26 }
  0x12   : > { %s1954_s14 = smov (!%p295_p7, %s1173_s14), 3  ;;  %s1219_s27 = sshll.u32 (%p1522_p4), %s1510_s30, 4 }
  0x13   : > { %s297_s17 = scalar_lea.vmem %s1884_s0, %s1954_s14  ;;  %s1451_s14 = smov 1  }
  0x14   : > { %v301_v4 = vld [vmem:[%s297_s17] sm:$0x3]  ;;  %s1096_s10 = scalar_lea.vmem (%p1522_p4), %s1892_s8, %s1219_s27 }
  0x15   : > { %v308_v5 = vrot.slane %v301_v4, %v1527_v2  ;;  %v312_v6 = vrot.slane %v301_v4, %v1532_v3 }
  0x17   : > { %313 = vrot.lane.b32.xlu0 %v308_v5, %s1440_s18 }
  0x1b   : > { %315 = vrot.lane.b32.xlu0 %v312_v6, %s1440_s18 }
  0x89   : > { %v314_v10 = vpop.permute.xlu0 %313 }
  0x8a   : > { %v321_v14 = vsel %vm317_vm0, 0.0, %v314_v10 }
  0x8d   : > { %v316_v13 = vpop.permute.xlu0 %315 }
  0x8e   : > { %v318_v15 = vsel %vm317_vm0, %v314_v10, %v316_v13  ;;  %v322_v16 = vsel %vm317_vm0, %v316_v13, 0.0  ;;  %vm406_vm0 = vcmask 1006592  }
  0x8f   : > { %v327_v17 = vcombine.low %v321_v14, %v318_v15  ;;  %v354_v19 = vrot.slane %v322_v16, %v333_v12 }
  0x91   : > { %v334_v18 = vrot.slane %v327_v17, %v333_v12 }
  0x93   : > { %v341_v20 = vrot.slane %v334_v18, %v333_v12  ;;  %v355_v21 = vcombine.low %v334_v18, %v354_v19 }
  0x95   : > { %v362_v22 = vrot.slane %v355_v21, %v333_v12  ;;  %v343_v33 = vsel %vm325_vm5, %v341_v20, 0.0  ;;  %vm1578_vm5 = vmand %vm370_vm13, %vm371_vm14  ;;  %vm411_vm14 = vcmp.lt.s32.totalorder %v1553_v26, 29 }
  0x96   : > { %v424_v42 = vrot.slane %v343_v33, %v1527_v2  ;;  %v428_v45 = vrot.slane %v343_v33, %v1532_v3 }
  0x97   : > { %383 = vrot.lane.b32.xlu0 %v362_v22, %s1443_s19  ;;  %363 = vrot.lane.b32.xlu1 %v362_v22, %s1444_s20 }
  0x9b   : > { %403 = vrot.lane.b32.xlu0 %v362_v22, %s1445_s21  ;;  %373 = vrot.lane.b32.xlu1 %v362_v22, %s1446_s22  ;;  %s1450_s21 = smov 2  }
  0x9f   : > { %393 = vrot.lane.b32.xlu1 %v362_v22, %s1447_s23  ;;  %519 = vperm.xlu0 %1304, %v515_v24   ;;  %v303_v24 = vld [vmem:[%s1886_s2 + $0x8] sm:$0xff] }
  0xa3   : > { %413 = vrot.lane.b32.xlu1 %v362_v22, %s1449_s24  ;;  %v302_v22 = vld [vmem:[%s1886_s2] sm:$0xff] }
  0xa7   : > { %524 = vperm.xlu1 %1305, %v516_v25  }
 0x109   : > { %v384_v27 = vpop.permute.xlu0 %383  ;;  %v364_v28 = vpop.permute.xlu1 %363 }
 0x10a   : > { %v385_v29 = vrot.slane %v384_v27, 1  ;;  %v365_v31 = vrot.slane %v364_v28, 1 }
 0x10c   : > { %v367_v32 = vsel %vm1893_vm6, %v364_v28, %v365_v31  ;;  %v387_v38 = vsel %vm1894_vm10, %v384_v27, %v385_v29  ;;  %vm391_vm6 = vcmp.lt.s32.totalorder %v1553_v26, 31 }
 0x10d   : > { %v369_v34 = vsel %vm1559_vm7, %v367_v32, 0.0  ;;  %v404_v35 = vpop.permute.xlu0 %403  ;;  %v374_v36 = vpop.permute.xlu1 %373  ;;  %v389_v46 = vsel %vm1572_vm1, %v387_v38, 0.0  ;;  %vm1595_vm13 = vmand %vm390_vm4, %vm391_vm6  ;;  %vm506_vm6 = vcmask 1043456   ;;  %vm1908_vm4 = vcmask 1040384  }
 0x10e   : > { %v405_v39 = vrot.slane %v404_v35, 1  ;;  %v375_v41 = vrot.slane %v374_v36, 1  ;;  %v435_v43 = vrot.slane %v369_v34, %v1527_v2  ;;  %v439_v44 = vrot.slane %v369_v34, %v1532_v3  ;;  %vm1909_vm10 = vmmov %vm1908_vm4 }
 0x10f   : > { %v457_v56 = vrot.slane %v389_v46, %v1527_v2  ;;  %v461_v60 = vrot.slane %v389_v46, %v1532_v3  ;;  %v734_v37 = vsel %vm1595_vm13, 1, %v1441_v7 }
 0x110   : > { %v377_v47 = vsel %vm1895_vm2, %v374_v36, %v375_v41  ;;  %vm1604_vm2 = vmand %vm400_vm12, %vm401_vm15  ;;  %v407_v53 = vsel %vm406_vm0, %v404_v35, %v405_v39  ;;  %v498_v57 = vsel %vm1908_vm4, %v424_v42, %v435_v43  ;;  %v499_v58 = vsel %vm1909_vm10, %v428_v45, %v439_v44 }
 0x111   : > { %v394_v48 = vpop.permute.xlu1 %393  ;;  %v379_v49 = vsel %vm1578_vm5, %v377_v47, 0.0  ;;  %v409_v1 = vsel %vm1604_vm2, %v407_v53, 0.0  ;;  %vm412_vm10 = vmand %vm410_vm9, %vm411_vm14  ;;  %vm1910_vm12 = vcmask 998400   ;;  %vm509_vm15 = vcmask 1044480  }
 0x112   : > { %v395_v51 = vrot.slane %v394_v48, 1  ;;  %v446_v54 = vrot.slane %v379_v49, %v1527_v2  ;;  %v450_v55 = vrot.slane %v379_v49, %v1532_v3  ;;  %v479_v13 = vrot.slane %v409_v1, %v1527_v2 }
 0x113   : > { %v483_v14 = vrot.slane %v409_v1, %v1532_v3  ;;  %vm512_vm0 = vcmask 1045504   ;;  %v645_v39 = vsel %vm1559_vm7, 1, %v1441_v7  ;;  %vm632_vm9 = vcmask 15360  }
 0x114   : > { %v397_v59 = vsel %vm396_vm11, %v394_v48, %v395_v51  ;;  %v501_v61 = vsel %vm500_vm3, %v498_v57, %v446_v54  ;;  %v502_v62 = vsel %vm500_vm3, %v499_v58, %v450_v55  ;;  %vm534_vm3 = vcmask 1046528  }
 0x115   : > { %v399_v63 = vsel %vm1595_vm13, %v397_v59, 0.0  ;;  %v414_v0 = vpop.permute.xlu1 %413  ;;  %v505_v8 = vsel %vm503_vm8, %v502_v62, %v461_v60  ;;  %v504_v9 = vsel %vm503_vm8, %v501_v61, %v457_v56  ;;  %vm527_vm8 = vcmask 56320   ;;  %v805_v62 = vld [vmem:[%s1889_s5 + $0x8] sm:$0xff] }
 0x116   : > { %v468_v4 = vrot.slane %v399_v63, %v1527_v2  ;;  %v472_v5 = vrot.slane %v399_v63, %v1532_v3  ;;  %v415_v6 = vrot.slane %v414_v0, 1  ;;  %v653_v44 = vrot.slane %v645_v39, %v1532_v3  ;;  %v804_v63 = vld [vmem:[%s1889_s5] sm:$0xff] }
 0x117   : > { %v649_v45 = vrot.slane %v645_v39, %v1527_v2 }
 0x118   : > { %v417_v10 = vsel %vm1910_vm12, %v414_v0, %v415_v6  ;;  %v508_v11 = vsel %vm506_vm6, %v505_v8, %v472_v5  ;;  %v507_v12 = vsel %vm506_vm6, %v504_v9, %v468_v4  ;;  %vm1652_vm14 = vcmp.eq.s32.totalorder %v653_v44, 1 }
 0x119   : > { %v419_v15 = vsel %vm412_vm10, %v417_v10, 0.0  ;;  %v511_v18 = vsel %vm509_vm15, %v508_v11, %v483_v14  ;;  %v510_v19 = vsel %vm509_vm15, %v507_v12, %v479_v13  ;;  %vm654_vm7 = vcmp.eq.s32.totalorder %v649_v45, 1  ;;  %vm1221_vm6 = vmpackc.low %vm1652_vm14, %vm1652_vm14  ;;  %v984_v13 = vld [vmem:[%s1891_s7 + $0x8] sm:$0xff] }
 0x11a   : > { %v490_v16 = vrot.slane %v419_v15, %v1527_v2  ;;  %v494_v17 = vrot.slane %v419_v15, %v1532_v3  ;;  %vm1224_vm4 = vmpackc.low %vm654_vm7, %vm654_vm7  ;;  %v660_v0 = vsel %vm1578_vm5, 1, %v1441_v7  ;;  %v699_v8 = vsel %vm1572_vm1, 1, %v1441_v7 }
 0x11b   : > { %v668_v5 = vrot.slane %v660_v0, %v1532_v3  ;;  %v664_v6 = vrot.slane %v660_v0, %v1527_v2  ;;  %vm1917_vm1 = vcmask 1039360  }
 0x11c   : > { %v514_v20 = vsel %vm512_vm0, %v511_v18, %v494_v17  ;;  %v513_v21 = vsel %vm512_vm0, %v510_v19, %v490_v16  ;;  %v707_v18 = vrot.slane %v699_v8, %v1532_v3  ;;  %v703_v19 = vrot.slane %v699_v8, %v1527_v2  ;;  %vm1918_vm5 = vmmov %vm1917_vm1 }
 0x11d   : > { %1174 = vmatprep.subr.msk.mxu0 %vm534_vm3, %v514_v20  ;;  %vm1689_vm10 = vcmp.eq.s32.totalorder %v668_v5, 1  ;;  %vm1693_vm12 = vcmp.eq.s32.totalorder %v664_v6, 1  ;;  %vm1919_vm15 = vmmov %vm1917_vm1 }
 0x11e   : > { %1175 = vmatpush1.msk.msra.mxu0 %vm534_vm3, %v513_v21  ;;  %v520_v25 = vpop.permute.xlu0 %519  ;;  %vm1920_vm0 = vmmov %vm1917_vm1 }
 0x11f   : > { %1176 = vmatmul.mubr.msk.f32.vlgmr.msra.gmra.mrb[0].mxu0 %vm527_vm8, %v302_v22  ;;  %vm1227_vm3 = vmpackc.low %vm1689_vm10, %vm1689_vm10  ;;  %vm1941_vm10 = vcmask 1039360  }
 0x120   : > { %611 = vmatprep.mubr.f32.mxu0 %v1448_v23  ;;  %vm1230_vm13 = vmpackc.low %vm1693_vm12, %vm1693_vm12 }
 0x121   : > { %vm1942_vm12 = vmmov %vm1941_vm10 }
 0x123   : > { %1177 = vmatmul.mubr.msk.f32.gmra.mrb[2].mxu0 %vm527_vm8, %v303_v24  ;;  %vm1726_vm8 = vcmp.eq.s32.totalorder %v707_v18, 1 }
 0x124   : > { %1066 = vmatprep.mubr.f32.mxu0 %v1448_v23 }
 0x126   : > { %v525_v31 = vpop.permute.xlu1 %524 }
 0x1f2   : > { %v607_v26 = vpop.f32.mrb[0].mxu0 }
 0x1f3   : > { %v608_v27 = vadd.f32 %v607_v26, %v520_v25  ;;  %v609_v28 = vpop.f32.mrb[1].mxu0 }
 0x1f4   : > { %v610_v29 = vadd.f32 %v609_v28, %v520_v25 }
 0x1f6   : > { %v1306_v32 = vpack.i.bf16 %v610_v29, %v608_v27  ;;  %v613_v33 = vpop.f32.mrb[2].mxu0 }
 0x1f7   : > { %v614_v34 = vadd.f32 %v613_v33, %v525_v31  ;;  %v615_v35 = vpop.f32.mrb[3].mxu0 }
 0x1f8   : > { %v616_v36 = vadd.f32 %v615_v35, %v525_v31  ;;  %1307 = vrot.lane.b32.xlu1 %v1306_v32, %s1450_s21  ;;  %v742_v31 = vrot.slane %v734_v37, %v1532_v3  ;;  %v769_v32 = vsel %vm1604_vm2, 1, %v1441_v7  ;;  %vm1925_vm2 = vcmask 1031168   ;;  %v900_v35 = vld [vmem:[%s1890_s6] sm:$0xff] }
 0x1f9   : > { %vm1928_vm7 = vmmov %vm1925_vm2 }
 0x1fa   : > { %v1311_v38 = vpack.i.bf16 %v616_v36, %v614_v34  ;;  %vm1736_vm14 = vcmp.eq.s32.totalorder %v742_v31, 1 }
 0x1fc   : > { %1312 = vrot.lane.b32.xlu0 %v1311_v38, %s1450_s21 }
 0x26a   : > { %v1308_v41 = vpop.permute.xlu1 %1307 }
 0x26b   : > { %v1310_v42 = vunpack.i.h.bf16 %v1308_v41  ;;  %v1309_v43 = vunpack.i.l.bf16 %v1308_v41  ;;  %v738_v41 = vrot.slane %v734_v37, %v1527_v2 }
 0x26d   : > { %v643_v46 = vsel %vm632_vm9, %v1310_v42, 0.0  ;;  %v633_v47 = vsel %vm632_vm9, %v1309_v43, %v1310_v42  ;;  %v641_v30 = vsel %vm632_vm9, 0.0, %v1309_v43 }
 0x26e   : > { %v1313_v48 = vpop.permute.xlu0 %1312  ;;  %v1321_v49 = vpack.i.bf16 %v643_v46, %v633_v47 }
 0x26f   : > { %v1315_v51 = vunpack.i.h.bf16 %v1313_v48  ;;  %v1314_v53 = vunpack.i.l.bf16 %v1313_v48 }
 0x270   : > { %1322 = vrot.lane.b32.xlu0 %v1321_v49, %s1446_s22  ;;  %1317 = vrot.lane.b32.xlu1 %v1321_v49, %s1444_s20 }
 0x271   : > { %v644_v55 = vsel %vm632_vm9, %v1315_v51, 0.0  ;;  %v634_v56 = vsel %vm632_vm9, %v1314_v53, %v1315_v51  ;;  %v642_v57 = vsel %vm632_vm9, 0.0, %v1314_v53  ;;  %vm1730_vm9 = vcmp.eq.s32.totalorder %v703_v19, 1 }
 0x272   : > { %v1331_v58 = vpack.i.bf16 %v644_v55, %v634_v56  ;;  %v1326_v59 = vpack.i.bf16 %v642_v57, %v641_v30  ;;  %v1220_v60 = vpack.c.bf16 %v634_v56, %v633_v47  ;;  %v1223_v61 = vpack.c.bf16 %v642_v57, %v641_v30  ;;  %v901_v47 = vld [vmem:[%s1890_s6 + $0x8] sm:$0xff] }
 0x273   : > { %v777_v57 = vrot.slane %v769_v32, %v1532_v3 }
 0x274   : > { %1332 = vrot.lane.b32.xlu0 %v1331_v58, %s1444_s20  ;;  %1327 = vrot.lane.b32.xlu1 %v1326_v59, %s1444_s20 }
 0x275   : > { %1222 = vmatprep.subr.msk.bf16.mxu1 %vm1221_vm6, %v1220_v60  ;;  %vm1929_vm6 = vcmask 1022976  }
 0x276   : > { %1225 = vmatpush1.bf16.msk.msra.mxu1 %vm1224_vm4, %v1223_v61  ;;  %vm1930_vm4 = vmmov %vm1925_vm2 }
 0x278   : > { %1337 = vrot.lane.b32.xlu0 %v1326_v59, %s1446_s22  ;;  %1342 = vrot.lane.b32.xlu1 %v1321_v49, %s1443_s19 }
 0x27c   : > { %1357 = vrot.lane.b32.xlu0 %v1331_v58, %s1443_s19  ;;  %1347 = vrot.lane.b32.xlu1 %v1331_v58, %s1446_s22 }
 0x280   : > { %1362 = vrot.lane.b32.xlu0 %v1321_v49, %s1447_s23  ;;  %1352 = vrot.lane.b32.xlu1 %v1326_v59, %s1443_s19 }
 0x284   : > { %1372 = vrot.lane.b32.xlu0 %v1326_v59, %s1447_s23  ;;  %1367 = vrot.lane.b32.xlu1 %v1331_v58, %s1447_s23  ;;  %v773_v58 = vrot.slane %v769_v32, %v1527_v2 }
 0x288   : > { %813 = vperm.xlu0 %1304, %v805_v62   ;;  %808 = vperm.xlu1 %1305, %v804_v63  }
 0x2e2   : > { %v1323_v1 = vpop.permute.xlu0 %1322  ;;  %v1318_v4 = vpop.permute.xlu1 %1317 }
 0x2e3   : > { %v1320_v9 = vunpack.i.h.bf16 %v1318_v4  ;;  %v1319_v10 = vunpack.i.l.bf16 %v1318_v4  ;;  %v1325_v28 = vunpack.i.h.bf16 %v1323_v1  ;;  %v1324_v29 = vunpack.i.l.bf16 %v1323_v1 }
 0x2e5   : > { %v688_v20 = vsel %vm1917_vm1, %v1319_v10, %v1320_v9  ;;  %v723_v46 = vsel %vm1925_vm2, %v1324_v29, %v1325_v28  ;;  %vm1931_vm1 = vmmov %vm1925_vm2 }
 0x2e6   : > { %v1333_v11 = vpop.permute.xlu0 %1332  ;;  %v1328_v12 = vpop.permute.xlu1 %1327  ;;  %vm1896_vm2 = vmpackc.low %vm1736_vm14, %vm1736_vm14 }
 0x2e7   : > { %v1335_v14 = vunpack.i.h.bf16 %v1333_v11  ;;  %v1334_v15 = vunpack.i.l.bf16 %v1333_v11  ;;  %v1330_v16 = vunpack.i.h.bf16 %v1328_v12  ;;  %v1329_v17 = vunpack.i.l.bf16 %v1328_v12 }
 0x2e9   : > { %v690_v21 = vsel %vm1918_vm5, %v1334_v15, %v1335_v14  ;;  %v689_v22 = vsel %vm1919_vm15, %v1330_v16, %v1334_v15  ;;  %v687_v24 = vsel %vm1920_vm0, %v1329_v17, %v1319_v10  ;;  %vm1233_vm5 = vmpackc.low %vm1726_vm8, %vm1726_vm8 }
 0x2ea   : > { %v1226_v25 = vpack.c.bf16 %v690_v21, %v688_v20  ;;  %v1229_v26 = vpack.c.bf16 %v689_v22, %v687_v24  ;;  %v1338_v50 = vpop.permute.xlu0 %1337  ;;  %v1343_v27 = vpop.permute.xlu1 %1342  ;;  %vm1236_vm15 = vmpackc.low %vm1730_vm9, %vm1730_vm9  ;;  %v618_v20 = vld [vmem:[%s1888_s4] sm:$0xff]  ;;  %v619_v21 = vld [vmem:[%s1888_s4 + $0x8] sm:$0xff]  ;;  %vm995_vm9 = vcmask 392192  }
 0x2eb   : > { %v1339_v33 = vunpack.i.l.bf16 %v1338_v50  ;;  %v1340_v36 = vunpack.i.h.bf16 %v1338_v50  ;;  %v1345_v38 = vunpack.i.h.bf16 %v1343_v27  ;;  %v1344_v39 = vunpack.i.l.bf16 %v1343_v27  ;;  %vm1932_vm0 = vmmov %vm1929_vm6 }
 0x2ec   : > { %1228 = vmatprep.subr.msk.bf16.mxu1 %vm1227_vm3, %v1226_v25  ;;  %vm1947_vm8 = vmpackc.low %vm1736_vm14, %vm1736_vm14 }
 0x2ed   : > { %1231 = vmatpush1.bf16.msk.msra.mxu1 %vm1230_vm13, %v1229_v26  ;;  %v722_v48 = vsel %vm1928_vm7, %v1339_v33, %v1324_v29  ;;  %v758_v59 = vsel %vm1932_vm0, %v1344_v39, %v1345_v38  ;;  %vm1756_vm7 = vcmp.eq.s32.totalorder %v738_v41, 1 }
 0x2ee   : > { %v1358_v52 = vpop.permute.xlu0 %1357  ;;  %v1348_v7 = vpop.permute.xlu1 %1347 }
 0x2ef   : > { %v1360_v42 = vunpack.i.h.bf16 %v1358_v52  ;;  %v1359_v43 = vunpack.i.l.bf16 %v1358_v52  ;;  %v1350_v44 = vunpack.i.h.bf16 %v1348_v7  ;;  %v1349_v45 = vunpack.i.l.bf16 %v1348_v7 }
 0x2f1   : > { %v760_v49 = vsel %vm1929_vm6, %v1359_v43, %v1360_v42  ;;  %v724_v51 = vsel %vm1930_vm4, %v1340_v36, %v1349_v45  ;;  %v725_v53 = vsel %vm1931_vm1, %v1349_v45, %v1350_v44  ;;  %vm1935_vm6 = vmmov %vm1932_vm0 }
 0x2f2   : > { %v1232_v54 = vpack.c.bf16 %v725_v53, %v723_v46  ;;  %v1235_v30 = vpack.c.bf16 %v724_v51, %v722_v48  ;;  %v1363_v55 = vpop.permute.xlu0 %1362  ;;  %v1353_v56 = vpop.permute.xlu1 %1352  ;;  %v1238_v63 = vpack.c.bf16 %v760_v49, %v758_v59  ;;  %vm1936_vm4 = vmmov %vm1932_vm0  ;;  %vm1780_vm0 = vcmp.eq.s32.totalorder %v777_v57, 1 }
 0x2f3   : > { %v1355_v60 = vunpack.i.h.bf16 %v1353_v56  ;;  %v1354_v61 = vunpack.i.l.bf16 %v1353_v56  ;;  %v1365_v2 = vunpack.i.h.bf16 %v1363_v55  ;;  %v1364_v3 = vunpack.i.l.bf16 %v1363_v55  ;;  %vm1242_vm1 = vmpackc.low %vm1756_vm7, %vm1756_vm7  ;;  %v983_v56 = vld [vmem:[%s1891_s7] sm:$0xff] }
 0x2f4   : > { %1234 = vmatprep.subr.msk.bf16.mxu1 %vm1233_vm5, %v1232_v54 }
 0x2f5   : > { %v759_v0 = vsel %vm1935_vm6, %v1355_v60, %v1359_v43  ;;  %v757_v1 = vsel %vm1936_vm4, %v1354_v61, %v1344_v39  ;;  %1237 = vmatpush1.bf16.msk.msra.mxu1 %vm1236_vm15, %v1235_v30  ;;  %vm1784_vm6 = vcmp.eq.s32.totalorder %v773_v58, 1  ;;  %v793_v15 = vsel %vm396_vm11, %v1364_v3, %v1365_v2  ;;  %vm1245_vm4 = vmpackc.low %vm1780_vm0, %vm1780_vm0 }
 0x2f6   : > { %v1241_v4 = vpack.c.bf16 %v759_v0, %v757_v1  ;;  %v1373_v5 = vpop.permute.xlu0 %1372  ;;  %v1368_v6 = vpop.permute.xlu1 %1367  ;;  %1240 = vmatprep.subr.msk.bf16.mxu1 %vm1896_vm2, %v1238_v63  ;;  %vm1248_vm2 = vmpackc.low %vm1784_vm6, %vm1784_vm6  ;;  %vm1945_vm0 = vcmask 1031168  }
 0x2f7   : > { %v1375_v10 = vunpack.i.h.bf16 %v1373_v5  ;;  %v1374_v11 = vunpack.i.l.bf16 %v1373_v5  ;;  %v1370_v12 = vunpack.i.h.bf16 %v1368_v6  ;;  %v1369_v14 = vunpack.i.l.bf16 %v1368_v6  ;;  %vm1946_vm6 = vmmov %vm1945_vm0 }
 0x2f9   : > { %v792_v16 = vsel %vm396_vm11, %v1374_v11, %v1364_v3  ;;  %v794_v17 = vsel %vm396_vm11, %v1375_v10, %v1369_v14  ;;  %v795_v37 = vsel %vm396_vm11, %v1369_v14, %v1370_v12  ;;  %1243 = vmatpush1.bf16.msk.msra.mxu1 %vm1242_vm1, %v1241_v4  ;;  %vm816_vm11 = vcmask 654336  }
 0x2fa   : > { %v1244_v18 = vpack.c.bf16 %v795_v37, %v793_v15  ;;  %v1247_v19 = vpack.c.bf16 %v794_v17, %v792_v16 }
 0x2fc   : > { %1246 = vmatprep.subr.msk.bf16.mxu1 %vm1245_vm4, %v1244_v18  ;;  %vm1949_vm4 = vmmov %vm1945_vm0 }
 0x2fd   : > { %1249 = vmatpush1.bf16.msk.msra.mxu1 %vm1248_vm2, %v1247_v19  ;;  %vm914_vm2 = vcmask 7168  }
 0x300   : > { %1198 = vmatmul.mubr.msk.f32.vlgmr.msra.gmra.mrb[0].mxu1 %vm816_vm11, %v618_v20 }
 0x301   : > { %893 = vmatprep.mubr.f32.mxu1 %v1448_v23 }
 0x304   : > { %1199 = vmatmul.mubr.msk.f32.gmra.mrb[2].mxu1 %vm816_vm11, %v619_v21 }
 0x307   : > { %v809_v22 = vpop.permute.xlu1 %808  ;;  %v814_v27 = vpop.permute.xlu0 %813 }
 0x3d3   : > { %v889_v24 = vpop.f32.mrb[0].mxu1 }
 0x3d4   : > { %v890_v25 = vadd.f32 %v889_v24, %v809_v22  ;;  %v891_v26 = vpop.f32.mrb[1].mxu1 }
 0x3d5   : > { %v892_v50 = vadd.f32 %v891_v26, %v809_v22 }
 0x3d7   : > { %v1376_v28 = vpack.i.bf16 %v892_v50, %v890_v25  ;;  %v895_v29 = vpop.f32.mrb[2].mxu1 }
 0x3d8   : > { %v896_v31 = vadd.f32 %v895_v29, %v814_v27  ;;  %v897_v32 = vpop.f32.mrb[3].mxu1 }
 0x3d9   : > { %v898_v33 = vadd.f32 %v897_v32, %v814_v27  ;;  %1377 = vrot.lane.b32.xlu1 %v1376_v28, %s1451_s14 }
 0x3db   : > { %v1381_v36 = vpack.i.bf16 %v898_v33, %v896_v31 }
 0x3dd   : > { %1382 = vrot.lane.b32.xlu0 %v1381_v36, %s1451_s14 }
 0x44b   : > { %v1378_v38 = vpop.permute.xlu1 %1377 }
 0x44c   : > { %v1380_v39 = vunpack.i.h.bf16 %v1378_v38  ;;  %v1379_v52 = vunpack.i.l.bf16 %v1378_v38 }
 0x44e   : > { %v925_v7 = vsel %vm914_vm2, %v1380_v39, 0.0  ;;  %v915_v41 = vsel %vm914_vm2, %v1379_v52, %v1380_v39  ;;  %v923_v46 = vsel %vm914_vm2, 0.0, %v1379_v52 }
 0x44f   : > { %v1383_v42 = vpop.permute.xlu0 %1382  ;;  %v1386_v43 = vpack.i.bf16 %v925_v7, %v915_v41 }
 0x450   : > { %v1385_v44 = vunpack.i.h.bf16 %v1383_v42  ;;  %v1384_v45 = vunpack.i.l.bf16 %v1383_v42 }
 0x451   : > { %1387 = vrot.lane.b32.xlu1 %v1386_v43, %s1444_s20 }
 0x452   : > { %v926_v48 = vsel %vm914_vm2, %v1385_v44, 0.0  ;;  %v924_v49 = vsel %vm914_vm2, 0.0, %v1384_v45  ;;  %v916_v51 = vsel %vm914_vm2, %v1384_v45, %v1385_v44 }
 0x453   : > { %v1253_v53 = vpack.c.bf16 %v924_v49, %v923_v46  ;;  %v1396_v54 = vpack.i.bf16 %v926_v48, %v916_v51  ;;  %v1391_v30 = vpack.i.bf16 %v924_v49, %v923_v46  ;;  %v1250_v55 = vpack.c.bf16 %v916_v51, %v915_v41 }
 0x455   : > { %1397 = vrot.lane.b32.xlu0 %v1396_v54, %s1444_s20  ;;  %1392 = vrot.lane.b32.xlu1 %v1391_v30, %s1444_s20 }
 0x456   : > { %1252 = vmatprep.subr.msk.bf16.mxu0 %vm1227_vm3, %v1250_v55  ;;  %vm1943_vm3 = vmmov %vm1941_vm10 }
 0x457   : > { %1255 = vmatpush1.bf16.msk.msra.mxu0 %vm1230_vm13, %v1253_v53  ;;  %vm1944_vm13 = vmmov %vm1943_vm3 }
 0x459   : > { %1402 = vrot.lane.b32.xlu0 %v1386_v43, %s1446_s22  ;;  %1407 = vrot.lane.b32.xlu1 %v1396_v54, %s1446_s22 }
 0x45d   : > { %1412 = vrot.lane.b32.xlu0 %v1391_v30, %s1446_s22  ;;  %987 = vperm.xlu1 %1305, %v983_v56  }
 0x461   : > { %992 = vperm.xlu0 %1304, %v984_v13  }
 0x4c3   : > { %v1388_v57 = vpop.permute.xlu1 %1387 }
 0x4c4   : > { %v1390_v40 = vunpack.i.h.bf16 %v1388_v57  ;;  %v1389_v58 = vunpack.i.l.bf16 %v1388_v57 }
 0x4c6   : > { %v948_v0 = vsel %vm1941_vm10, %v1389_v58, %v1390_v40 }
 0x4c7   : > { %v1398_v59 = vpop.permute.xlu0 %1397  ;;  %v1393_v60 = vpop.permute.xlu1 %1392 }
 0x4c8   : > { %v1400_v61 = vunpack.i.h.bf16 %v1398_v59  ;;  %v1399_v63 = vunpack.i.l.bf16 %v1398_v59  ;;  %v1395_v2 = vunpack.i.h.bf16 %v1393_v60  ;;  %v1394_v3 = vunpack.i.l.bf16 %v1393_v60 }
 0x4ca   : > { %v950_v1 = vsel %vm1942_vm12, %v1399_v63, %v1400_v61  ;;  %v949_v4 = vsel %vm1943_vm3, %v1395_v2, %v1399_v63  ;;  %v947_v5 = vsel %vm1944_vm13, %v1394_v3, %v1389_v58 }
 0x4cb   : > { %v1256_v6 = vpack.c.bf16 %v950_v1, %v948_v0  ;;  %v1259_v8 = vpack.c.bf16 %v949_v4, %v947_v5  ;;  %v1403_v9 = vpop.permute.xlu0 %1402  ;;  %v1408_v10 = vpop.permute.xlu1 %1407 }
 0x4cc   : > { %v1405_v11 = vunpack.i.h.bf16 %v1403_v9  ;;  %v1404_v12 = vunpack.i.l.bf16 %v1403_v9  ;;  %v1410_v14 = vunpack.i.h.bf16 %v1408_v10  ;;  %v1409_v15 = vunpack.i.l.bf16 %v1408_v10 }
 0x4cd   : > { %1258 = vmatprep.subr.msk.bf16.mxu0 %vm1233_vm5, %v1256_v6  ;;  %vm1948_vm5 = vmmov %vm1945_vm0 }
 0x4ce   : > { %v972_v16 = vsel %vm1945_vm0, %v1404_v12, %v1405_v11  ;;  %v974_v17 = vsel %vm1946_vm6, %v1409_v15, %v1410_v14  ;;  %1261 = vmatpush1.bf16.msk.msra.mxu0 %vm1236_vm15, %v1259_v8 }
 0x4cf   : > { %v1262_v37 = vpack.c.bf16 %v974_v17, %v972_v16  ;;  %v1413_v18 = vpop.permute.xlu0 %1412 }
 0x4d0   : > { %v1415_v19 = vunpack.i.h.bf16 %v1413_v18  ;;  %v1414_v20 = vunpack.i.l.bf16 %v1413_v18 }
 0x4d1   : > { %1264 = vmatprep.subr.msk.bf16.mxu0 %vm1947_vm8, %v1262_v37 }
 0x4d2   : > { %v971_v34 = vsel %vm1948_vm5, %v1414_v20, %v1404_v12  ;;  %v973_v21 = vsel %vm1949_vm4, %v1415_v19, %v1409_v15 }
 0x4d3   : > { %v1265_v22 = vpack.c.bf16 %v973_v21, %v971_v34 }
 0x4d5   : > { %1267 = vmatpush1.bf16.msk.msra.mxu0 %vm1242_vm1, %v1265_v22 }
 0x4d8   : > { %1212 = vmatmul.mubr.msk.f32.vlgmr.msra.gmra.mrb[4].mxu0 %vm995_vm9, %v900_v35 }
 0x4d9   : > { %1072 = vmatprep.mubr.f32.mxu0 %v1448_v23 }
 0x4dc   : > { %1213 = vmatmul.mubr.msk.f32.gmra.mrb[6].mxu0 %vm995_vm9, %v901_v47  ;;  %v988_v24 = vpop.permute.xlu1 %987 }
 0x4e0   : > { %v993_v28 = vpop.permute.xlu0 %992 }
 0x5ab   : > { %v1068_v25 = vpop.f32.mrb[4].mxu0 }
 0x5ac   : > { %v1069_v62 = vadd.f32 %v1068_v25, %v988_v24  ;;  %v1070_v26 = vpop.f32.mrb[5].mxu0 }
 0x5ad   : > { %v1071_v50 = vadd.f32 %v1070_v26, %v988_v24 }
 0x5ae   : > { %v1079_v27 = vmax.f32 %v1069_v62, 0.0 }
 0x5af   : > { %v1080_v29 = vmax.f32 %v1071_v50, 0.0  ;;  %v1074_v31 = vpop.f32.mrb[6].mxu0  ;;  %1093 = sbr.rel (!%p1522_p4) target bundleno = 1470 (0x5be), region = 56 }
 0x5b0   : > { %1083 = vst [vmem:[%s293_s29] sm:$0xff] %v1079_v27  ;;  %v1075_v32 = vadd.f32 %v1074_v31, %v993_v28  ;;  %v1076_v23 = vpop.f32.mrb[7].mxu0 }
 0x5b1   : > { %1084 = vst [vmem:[%s293_s29 + $0x8] sm:$0xff] %v1080_v29  ;;  %v1077_v33 = vadd.f32 %v1076_v23, %v993_v28 }
 0x5b2   : > { %v1081_v36 = vmax.f32 %v1075_v32, 0.0 }
 0x5b3   : > { %v1082_v38 = vmax.f32 %v1077_v33, 0.0 }
 0x5b4   : > { %1085 = vst [vmem:[%s293_s29 + $0x10] sm:$0xff] %v1081_v36 }
 0x5b5   : > { %1086 = vst [vmem:[%s293_s29 + $0x18] sm:$0xff] %v1082_v38 }
 0x5b7   : > { %v1109_v39 = vld [vmem:[%s293_s29] sm:$0xff] }
 0x5b8   : > { %v1111_v52 = vld [vmem:[%s293_s29 + $0x8] sm:$0xff]  ;;  %1110 = vst [vmem:[%s1096_s10] sm:$0xff] %v1109_v39 }
 0x5b9   : > { %1112 = vst [vmem:[%s1096_s10 + $0x8] sm:$0xff] %v1111_v52 }
 0x5bb   : > { %v1113_v7 = vld [vmem:[%s293_s29 + $0x10] sm:$0xff] }
 0x5bc   : > { %v1115_v41 = vld [vmem:[%s293_s29 + $0x18] sm:$0xff]  ;;  %1114 = vst [vmem:[%s1096_s10 + $0x20] sm:$0xff] %v1113_v7 }
 0x5bd   : > { %1116 = vst [vmem:[%s1096_s10 + $0x28] sm:$0xff] %v1115_v41 }
 0x5be PF: > { %p15_p8 = scmp.ge.s32.totalorder %s1512_s9, 4   ;;  %s1950_s27 = smov %s1434_s28 }
 0x5bf   : > { %s1951_s28 = smov %s1520_s12  ;;  %s1952_s29 = smov %s1512_s9 }
 0x5c0   :  { %17 = sbr.rel (!%p15_p8) target bundleno = 2 (0x2), region = 105 }

</bundles_post_ra>
